<compile_context>
chip_gen: v7x
topology: tpu7x:2x2x1
jax: 0.10.0
libtpu: 0.0.40
codegen_flags: <defaults>
</compile_context>

<pallas_src>
import jax
import jax.numpy as jnp
from jax.experimental import pallas as pl
from jax.experimental.pallas import tpu as pltpu

EPS = 1e-5                       # torch.nn.BatchNorm2d default
_VMEM_LIMIT = 32 * 1024 * 1024   # within default scoped VMEM on v5e/v6e/v7x


# ---------------------------------------------------------------------------
# Helpers (host-side glue)
# ---------------------------------------------------------------------------
def _pick_tile_h(H, max_tile=64):
    """Largest divisor of H <= max_tile that still gives >= 2 row tiles."""
    best = None
    for th in range(1, min(H, max_tile) + 1):
        if H % th == 0 and H // th >= 2:
            best = th
    return best if best is not None else H


def _reflect_pad_halo_tiles(x_nhwc, tile_h, dtype):
    """(N,H,W,C) -> (N, HT, tile_h+2, W+2, C): reflect-pad + overlapping row tiles.

    Only ~(tile_h+2)/tile_h of the input is duplicated (the 3x3 halo), instead of the
    9x blow-up of a full host-side im2col."""
    N, H, W, C = x_nhwc.shape
    xp = jnp.pad(x_nhwc, ((0, 0), (1, 1), (1, 1), (0, 0)), mode="reflect")
    ht = H // tile_h
    tiles = jnp.stack(
        [xp[:, t * tile_h:t * tile_h + tile_h + 2] for t in range(ht)], axis=1)
    return tiles.astype(dtype)


# ---------------------------------------------------------------------------
# Pallas kernels
# ---------------------------------------------------------------------------
def _conv3x3_relu_tile(xt, wmat, bias):
    """In-kernel im2col + MXU matmul + bias + ReLU for one halo row tile.

    xt:   (TH+2, W+2, C) bf16 reflect-padded tile
    wmat: (9C, C)        bf16 weights (kh, kw, cin ordered rows)
    bias: (1, C)         f32
    returns (TH*W, C) f32
    """
    xt = xt.astype(jnp.float32)                    # keep slicing/elementwise in f32
    thp2, wp2, c = xt.shape
    th, w = thp2 - 2, wp2 - 2
    cols = [xt[kh:kh + th, kw:kw + w, :].reshape(th * w, c)
            for kh in range(3) for kw in range(3)]
    patches = jnp.concatenate(cols, axis=1).astype(jnp.bfloat16)   # (TH*W, 9C)
    acc = jnp.dot(patches, wmat, preferred_element_type=jnp.float32)
    return jnp.maximum(acc + bias, 0.0)            # (TH*W, C) f32


def _conv_relu_kernel(xt_ref, w_ref, b_ref, y_ref):
    y = _conv3x3_relu_tile(xt_ref[...], w_ref[...], b_ref[...])
    y_ref[...] = y.astype(y_ref.dtype)


def _conv_relu_stats_kernel(xt_ref, w_ref, b_ref, y_ref, stats_ref):
    # conv2 + ReLU, plus BatchNorm statistics accumulated across the whole grid
    # into a VMEM-resident (2, C) output block (row 0: sum, row 1: sum of squares).
    y = _conv3x3_relu_tile(xt_ref[...], w_ref[...], b_ref[...])
    y_ref[...] = y.astype(y_ref.dtype)

    part = jnp.concatenate(
        [jnp.sum(y, axis=0, keepdims=True),
         jnp.sum(y * y, axis=0, keepdims=True)], axis=0)           # (2, C)
    first = (pl.program_id(0) == 0) & (pl.program_id(1) == 0)

    @pl.when(first)
    def _():
        stats_ref[...] = part

    @pl.when(jnp.logical_not(first))
    def _():
        stats_ref[...] = stats_ref[...] + part


def _bn_residual_kernel(y_ref, x_ref, scale_ref, shift_ref, o_ref):
    # y * scale + shift + x   with scale = gamma*rsqrt(var+eps), shift = beta - mean*scale
    o_ref[...] = (y_ref[...] * scale_ref[...] + shift_ref[...]
                  + x_ref[...]).astype(o_ref.dtype)


# ---------------------------------------------------------------------------
# Wrappers
# ---------------------------------------------------------------------------
def _conv3x3_reflect_relu(x_nhwc, w_oihw, bias, *, with_stats):
    """Conv2d(C, C, 3, padding='same', padding_mode='reflect') + ReLU.

    Returns y in flat tile layout (N, HT, TH*W, C) f32, and optionally the
    (2, C) [sum; sumsq] BatchNorm statistics accumulated over all rows."""
    N, H, W, C = x_nhwc.shape
    th = _pick_tile_h(H)
    ht = H // th

    x_tiles = _reflect_pad_halo_tiles(x_nhwc, th, jnp.bfloat16)  # (N,HT,TH+2,W+2,C)
    wmat = jnp.transpose(w_oihw, (2, 3, 1, 0)).reshape(9 * C, C).astype(jnp.bfloat16)
    b2 = bias.reshape(1, C).astype(jnp.float32)

    in_specs = [
        pl.BlockSpec((None, None, th + 2, W + 2, C), lambda n, t: (n, t, 0, 0, 0)),
        pl.BlockSpec((9 * C, C), lambda n, t: (0, 0)),   # VMEM-resident weights
        pl.BlockSpec((1, C), lambda n, t: (0, 0)),       # VMEM-resident bias
    ]
    y_spec = pl.BlockSpec((None, None, th * W, C), lambda n, t: (n, t, 0, 0))
    y_shape = jax.ShapeDtypeStruct((N, ht, th * W, C), jnp.float32)

    if not with_stats:
        return pl.pallas_call(
            _conv_relu_kernel,
            out_shape=y_shape,
            grid=(N, ht),
            in_specs=in_specs,
            out_specs=y_spec,
            compiler_params=pltpu.CompilerParams(
                dimension_semantics=("parallel", "parallel"),
                vmem_limit_bytes=_VMEM_LIMIT),
        )(x_tiles, wmat, b2)

    y, stats = pl.pallas_call(
        _conv_relu_stats_kernel,
        out_shape=(y_shape, jax.ShapeDtypeStruct((2, C), jnp.float32)),
        grid=(N, ht),
        in_specs=in_specs,
        out_specs=(y_spec, pl.BlockSpec((2, C), lambda n, t: (0, 0))),
        compiler_params=pltpu.CompilerParams(
            # stats block accumulates across BOTH grid axes -> must be arbitrary
            dimension_semantics=("arbitrary", "arbitrary"),
            vmem_limit_bytes=_VMEM_LIMIT),
    )(x_tiles, wmat, b2)
    return y, stats


def _bn_apply_residual(y_flat, x_flat, stats, gamma, beta, n_rows):
    """Phase 2 of BN: normalize with global batch stats, affine, add residual."""
    N, HT, S, C = y_flat.shape
    mean = stats[0] / n_rows
    var = stats[1] / n_rows - mean * mean            # biased variance (training mode)
    inv = jax.lax.rsqrt(var + EPS)
    g = gamma.astype(jnp.float32)
    scale = (g * inv).reshape(1, C)
    shift = (beta.astype(jnp.float32) - mean * g * inv).reshape(1, C)

    return pl.pallas_call(
        _bn_residual_kernel,
        out_shape=jax.ShapeDtypeStruct((N, HT, S, C), jnp.float32),
        grid=(N, HT),
        in_specs=[
            pl.BlockSpec((None, None, S, C), lambda n, t: (n, t, 0, 0)),
            pl.BlockSpec((None, None, S, C), lambda n, t: (n, t, 0, 0)),
            pl.BlockSpec((1, C), lambda n, t: (0, 0)),
            pl.BlockSpec((1, C), lambda n, t: (0, 0)),
        ],
        out_specs=pl.BlockSpec((None, None, S, C), lambda n, t: (n, t, 0, 0)),
        compiler_params=pltpu.CompilerParams(
            dimension_semantics=("parallel", "parallel"),
            vmem_limit_bytes=_VMEM_LIMIT),
    )(y_flat, x_flat, scale, shift)


@jax.jit
def residual_cnn_block(x_nchw, params):
    """Forward pass of ResidualCNNblock (BatchNorm in training mode). NCHW f32 in/out."""
    x = jnp.transpose(x_nchw, (0, 2, 3, 1)).astype(jnp.float32)   # -> NHWC
    N, H, W, C = x.shape
    th = _pick_tile_h(H)
    ht = H // th

    y1 = _conv3x3_reflect_relu(x, params["w1"], params["b1"], with_stats=False)
    y1_nhwc = y1.reshape(N, H, W, C)                              # contiguous reshape
    y2, stats = _conv3x3_reflect_relu(y1_nhwc, params["w2"], params["b2"],
                                      with_stats=True)

    x_flat = x.reshape(N, ht, th * W, C)                          # matches y2 layout
    out = _bn_apply_residual(y2, x_flat, stats, params["gamma"], params["beta"],
                             N * H * W)
    out = out.reshape(N, H, W, C)
    return jnp.transpose(out, (0, 3, 1, 2))                       # -> NCHW


# ---------------------------------------------------------------------------
# Pure-JAX reference (mimics the kernel's bf16 matmul inputs; BN math in f32)
# ---------------------------------------------------------------------------
def _im2col_reflect3x3(x_nhwc):
    N, H, W, C = x_nhwc.shape
    xp = jnp.pad(x_nhwc, ((0, 0), (1, 1), (1, 1), (0, 0)), mode="reflect")
    patches = jnp.stack(
        [xp[:, kh:kh + H, kw:kw + W, :] for kh in range(3) for kw in range(3)], axis=3)
    return patches.reshape(N * H * W, 9 * C)


def _ref_forward(x_nchw, params):
    x = jnp.transpose(x_nchw, (0, 2, 3, 1)).astype(jnp.float32)
    N, H, W, C = x.shape

    def conv(inp, w, b):
        a = _im2col_reflect3x3(inp).astype(jnp.bfloat16)
        wmat = jnp.transpose(w, (2, 3, 1, 0)).reshape(9 * C, C).astype(jnp.bfloat16)
        y = jnp.dot(a, wmat, preferred_element_type=jnp.float32) + b.reshape(1, C)
        return jnp.maximum(y, 0.0).reshape(N, H, W, C)

    y = conv(x, params["w1"], params["b1"])
    y = conv(y, params["w2"], params["b2"])
    y2 = y.reshape(-1, C)
    mean = jnp.mean(y2, axis=0, keepdims=True)
    var = jnp.mean((y2 - mean) ** 2, axis=0, keepdims=True)
    bn = (y2 - mean) * jax.lax.rsqrt(var + EPS) * params["gamma"].reshape(1, C) \
         + params["beta"].reshape(1, C)
    out = bn.reshape(N, H, W, C) + x
    return jnp.transpose(out, (0, 3, 1, 2))


# ---------------------------------------------------------------------------
# Main
# ---------------------------------------------------------------------------
if __name__ == "__main__":
    key = jax.random.PRNGKey(0)
    N, C, H, W = 2, 4, 16, 16

    kx, kw1, kb1, kw2, kb2 = jax.random.split(key, 5)
    x = jax.random.normal(kx, (N, C, H, W), dtype=jnp.float32)

    fan_in = C * 3 * 3
    scale = 1.0 / jnp.sqrt(fan_in)
    params = {
        "w1": jax.random.uniform(kw1, (C, C, 3, 3), jnp.float32, -scale, scale),
        "b1": jax.random.uniform(kb1, (C,), jnp.float32, -scale, scale),
        "w2": jax.random.uniform(kw2, (C, C, 3, 3), jnp.float32, -scale, scale),
        "b2": jax.random.uniform(kb2, (C,), jnp.float32, -scale, scale),
        "gamma": jnp.ones((C,), jnp.float32),   # BatchNorm2d default weight
        "beta": jnp.zeros((C,), jnp.float32),   # BatchNorm2d default bias
    }

    out = jax.block_until_ready(residual_cnn_block(x, params))
    ref = jax.block_until_ready(_ref_forward(x, params))

    assert out.shape == (N, C, H, W)
    max_err = float(jnp.max(jnp.abs(out - ref)))
    assert jnp.allclose(out, ref, atol=1e-2, rtol=1e-2), \
        f"Pallas output mismatch (max abs err {max_err})"

    print("KERNEL_OK")
</pallas_src>

<mosaic_0001>
module attributes {stable_mosaic.version = 11 : i64} {
  func.func @_conv_relu_kernel(%arg0: i32, %arg1: i32, %arg2: memref<1x1x10x18x4xbf16, #tpu.memory_space<vmem>>, %arg3: memref<36x4xbf16, #tpu.memory_space<vmem>>, %arg4: memref<1x4xf32, #tpu.memory_space<vmem>>, %arg5: memref<1x1x128x4xf32, #tpu.memory_space<vmem>>) attributes {dimension_semantics = [#tpu.dimension_semantics<parallel>, #tpu.dimension_semantics<parallel>], iteration_bounds = array<i64: 2, 2>, scalar_prefetch = 0 : i64, scratch_operands = 0 : i64, tpu.core_type = #tpu.core_type<tc>, window_params = [{transform_indices = @transform_0, window_bounds = array<i64: 1, 1, 10, 18, 4>}, {pipeline_mode = #tpu.pipeline_mode<synchronous>, transform_indices = @transform_1, window_bounds = array<i64: 36, 4>}, {pipeline_mode = #tpu.pipeline_mode<synchronous>, transform_indices = @transform_2, window_bounds = array<i64: 1, 4>}, {transform_indices = @transform_3, window_bounds = array<i64: 1, 1, 128, 4>}]} {
    %c0 = arith.constant 0 : index
    %c0_0 = arith.constant 0 : index
    %c0_1 = arith.constant 0 : index
    %c0_2 = arith.constant 0 : index
    %c0_3 = arith.constant 0 : index
    %0 = vector.load %arg2[%c0, %c0_0, %c0_1, %c0_2, %c0_3] : memref<1x1x10x18x4xbf16, #tpu.memory_space<vmem>>, vector<1x1x10x18x4xbf16>
    %1 = vector.shape_cast %0 : vector<1x1x10x18x4xbf16> to vector<10x18x4xbf16>
    %c0_4 = arith.constant 0 : index
    %c0_5 = arith.constant 0 : index
    %2 = vector.load %arg3[%c0_4, %c0_5] : memref<36x4xbf16, #tpu.memory_space<vmem>>, vector<36x4xbf16>
    %c0_6 = arith.constant 0 : index
    %c0_7 = arith.constant 0 : index
    %3 = vector.load %arg4[%c0_6, %c0_7] : memref<1x4xf32, #tpu.memory_space<vmem>>, vector<1x4xf32>
    %4 = arith.extf %1 : vector<10x18x4xbf16> to vector<10x18x4xf32>
    %5 = vector.extract_strided_slice %4 {offsets = [0, 0, 0], sizes = [8, 16, 4], strides = [1, 1, 1]} : vector<10x18x4xf32> to vector<8x16x4xf32>
    %6 = vector.shape_cast %5 : vector<8x16x4xf32> to vector<128x4xf32>
    %7 = vector.extract_strided_slice %4 {offsets = [0, 1, 0], sizes = [8, 16, 4], strides = [1, 1, 1]} : vector<10x18x4xf32> to vector<8x16x4xf32>
    %8 = vector.shape_cast %7 : vector<8x16x4xf32> to vector<128x4xf32>
    %9 = vector.extract_strided_slice %4 {offsets = [0, 2, 0], sizes = [8, 16, 4], strides = [1, 1, 1]} : vector<10x18x4xf32> to vector<8x16x4xf32>
    %10 = vector.shape_cast %9 : vector<8x16x4xf32> to vector<128x4xf32>
    %11 = vector.extract_strided_slice %4 {offsets = [1, 0, 0], sizes = [8, 16, 4], strides = [1, 1, 1]} : vector<10x18x4xf32> to vector<8x16x4xf32>
    %12 = vector.shape_cast %11 : vector<8x16x4xf32> to vector<128x4xf32>
    %13 = vector.extract_strided_slice %4 {offsets = [1, 1, 0], sizes = [8, 16, 4], strides = [1, 1, 1]} : vector<10x18x4xf32> to vector<8x16x4xf32>
    %14 = vector.shape_cast %13 : vector<8x16x4xf32> to vector<128x4xf32>
    %15 = vector.extract_strided_slice %4 {offsets = [1, 2, 0], sizes = [8, 16, 4], strides = [1, 1, 1]} : vector<10x18x4xf32> to vector<8x16x4xf32>
    %16 = vector.shape_cast %15 : vector<8x16x4xf32> to vector<128x4xf32>
    %17 = vector.extract_strided_slice %4 {offsets = [2, 0, 0], sizes = [8, 16, 4], strides = [1, 1, 1]} : vector<10x18x4xf32> to vector<8x16x4xf32>
    %18 = vector.shape_cast %17 : vector<8x16x4xf32> to vector<128x4xf32>
    %19 = vector.extract_strided_slice %4 {offsets = [2, 1, 0], sizes = [8, 16, 4], strides = [1, 1, 1]} : vector<10x18x4xf32> to vector<8x16x4xf32>
    %20 = vector.shape_cast %19 : vector<8x16x4xf32> to vector<128x4xf32>
    %21 = vector.extract_strided_slice %4 {offsets = [2, 2, 0], sizes = [8, 16, 4], strides = [1, 1, 1]} : vector<10x18x4xf32> to vector<8x16x4xf32>
    %22 = vector.shape_cast %21 : vector<8x16x4xf32> to vector<128x4xf32>
    %23 = tpu.concatenate %6, %8, %10, %12, %14, %16, %18, %20, %22 in 1 : vector<128x4xf32>, vector<128x4xf32>, vector<128x4xf32>, vector<128x4xf32>, vector<128x4xf32>, vector<128x4xf32>, vector<128x4xf32>, vector<128x4xf32>, vector<128x4xf32> -> vector<128x36xf32>
    %24 = arith.truncf %23 : vector<128x36xf32> to vector<128x36xbf16>
    %cst = arith.constant dense<0.000000e+00> : vector<128x4xf32>
    %25 = tpu.matmul %24, %2, %cst {dimension_numbers = #tpu.dot_dimension_numbers<[1], [0], [0], [1], [0, 0, 1, 1], [], []>} : vector<128x36xbf16>, vector<36x4xbf16>, vector<128x4xf32> -> vector<128x4xf32>
    %26 = vector.broadcast %3 : vector<1x4xf32> to vector<128x4xf32>
    %27 = arith.addf %25, %26 : vector<128x4xf32>
    %cst_8 = arith.constant 0.000000e+00 : f32
    %28 = vector.broadcast %cst_8 : f32 to vector<128x4xf32>
    %29 = arith.maximumf %27, %28 : vector<128x4xf32>
    %c0_9 = arith.constant 0 : index
    %c0_10 = arith.constant 0 : index
    %c0_11 = arith.constant 0 : index
    %c0_12 = arith.constant 0 : index
    %30 = vector.load %arg5[%c0_9, %c0_10, %c0_11, %c0_12] : memref<1x1x128x4xf32, #tpu.memory_space<vmem>>, vector<1x1x128x4xf32>
    %31 = vector.shape_cast %30 : vector<1x1x128x4xf32> to vector<128x4xf32>
    %32 = vector.shape_cast %29 : vector<128x4xf32> to vector<1x1x128x4xf32>
    tpu.vector_store %arg5[%c0_9, %c0_10, %c0_11, %c0_12], %32 {strides = array<i32>} : memref<1x1x128x4xf32, #tpu.memory_space<vmem>>, vector<1x1x128x4xf32>,
    return
  }
  func.func @transform_0(%arg0: i32, %arg1: i32) -> (i32, i32, i32, i32, i32) {
    %c0_i32 = arith.constant 0 : i32
    %c0_i32_0 = arith.constant 0 : i32
    %c0_i32_1 = arith.constant 0 : i32
    %c0_i32_2 = arith.constant 0 : i32
    return %arg0, %arg1, %c0_i32, %c0_i32_0, %c0_i32_1 : i32, i32, i32, i32, i32
  }
  func.func @transform_1(%arg0: i32, %arg1: i32) -> (i32, i32) {
    %c0_i32 = arith.constant 0 : i32
    %c0_i32_0 = arith.constant 0 : i32
    %c0_i32_1 = arith.constant 0 : i32
    return %c0_i32, %c0_i32_0 : i32, i32
  }
  func.func @transform_2(%arg0: i32, %arg1: i32) -> (i32, i32) {
    %c0_i32 = arith.constant 0 : i32
    %c0_i32_0 = arith.constant 0 : i32
    %c0_i32_1 = arith.constant 0 : i32
    return %c0_i32, %c0_i32_0 : i32, i32
  }
  func.func @transform_3(%arg0: i32, %arg1: i32) -> (i32, i32, i32, i32) {
    %c0_i32 = arith.constant 0 : i32
    %c0_i32_0 = arith.constant 0 : i32
    %c0_i32_1 = arith.constant 0 : i32
    return %arg0, %arg1, %c0_i32, %c0_i32_0 : i32, i32, i32, i32
  }
}

module attributes {stable_mosaic.version = 11 : i64} {
  func.func @_conv_relu_stats_kernel(%arg0: i32, %arg1: i32, %arg2: memref<1x1x10x18x4xbf16, #tpu.memory_space<vmem>>, %arg3: memref<36x4xbf16, #tpu.memory_space<vmem>>, %arg4: memref<1x4xf32, #tpu.memory_space<vmem>>, %arg5: memref<1x1x128x4xf32, #tpu.memory_space<vmem>>, %arg6: memref<2x4xf32, #tpu.memory_space<vmem>>) attributes {dimension_semantics = [#tpu.dimension_semantics<arbitrary>, #tpu.dimension_semantics<arbitrary>], iteration_bounds = array<i64: 2, 2>, scalar_prefetch = 0 : i64, scratch_operands = 0 : i64, tpu.core_type = #tpu.core_type<tc>, window_params = [{transform_indices = @transform_0, window_bounds = array<i64: 1, 1, 10, 18, 4>}, {pipeline_mode = #tpu.pipeline_mode<synchronous>, transform_indices = @transform_1, window_bounds = array<i64: 36, 4>}, {pipeline_mode = #tpu.pipeline_mode<synchronous>, transform_indices = @transform_2, window_bounds = array<i64: 1, 4>}, {transform_indices = @transform_3, window_bounds = array<i64: 1, 1, 128, 4>}, {pipeline_mode = #tpu.pipeline_mode<synchronous>, transform_indices = @transform_4, window_bounds = array<i64: 2, 4>}]} {
    %c0 = arith.constant 0 : index
    %c0_0 = arith.constant 0 : index
    %c0_1 = arith.constant 0 : index
    %c0_2 = arith.constant 0 : index
    %c0_3 = arith.constant 0 : index
    %0 = vector.load %arg2[%c0, %c0_0, %c0_1, %c0_2, %c0_3] : memref<1x1x10x18x4xbf16, #tpu.memory_space<vmem>>, vector<1x1x10x18x4xbf16>
    %1 = vector.shape_cast %0 : vector<1x1x10x18x4xbf16> to vector<10x18x4xbf16>
    %c0_4 = arith.constant 0 : index
    %c0_5 = arith.constant 0 : index
    %2 = vector.load %arg3[%c0_4, %c0_5] : memref<36x4xbf16, #tpu.memory_space<vmem>>, vector<36x4xbf16>
    %c0_6 = arith.constant 0 : index
    %c0_7 = arith.constant 0 : index
    %3 = vector.load %arg4[%c0_6, %c0_7] : memref<1x4xf32, #tpu.memory_space<vmem>>, vector<1x4xf32>
    %4 = arith.extf %1 : vector<10x18x4xbf16> to vector<10x18x4xf32>
    %5 = vector.extract_strided_slice %4 {offsets = [0, 0, 0], sizes = [8, 16, 4], strides = [1, 1, 1]} : vector<10x18x4xf32> to vector<8x16x4xf32>
    %6 = vector.shape_cast %5 : vector<8x16x4xf32> to vector<128x4xf32>
    %7 = vector.extract_strided_slice %4 {offsets = [0, 1, 0], sizes = [8, 16, 4], strides = [1, 1, 1]} : vector<10x18x4xf32> to vector<8x16x4xf32>
    %8 = vector.shape_cast %7 : vector<8x16x4xf32> to vector<128x4xf32>
    %9 = vector.extract_strided_slice %4 {offsets = [0, 2, 0], sizes = [8, 16, 4], strides = [1, 1, 1]} : vector<10x18x4xf32> to vector<8x16x4xf32>
    %10 = vector.shape_cast %9 : vector<8x16x4xf32> to vector<128x4xf32>
    %11 = vector.extract_strided_slice %4 {offsets = [1, 0, 0], sizes = [8, 16, 4], strides = [1, 1, 1]} : vector<10x18x4xf32> to vector<8x16x4xf32>
    %12 = vector.shape_cast %11 : vector<8x16x4xf32> to vector<128x4xf32>
    %13 = vector.extract_strided_slice %4 {offsets = [1, 1, 0], sizes = [8, 16, 4], strides = [1, 1, 1]} : vector<10x18x4xf32> to vector<8x16x4xf32>
    %14 = vector.shape_cast %13 : vector<8x16x4xf32> to vector<128x4xf32>
    %15 = vector.extract_strided_slice %4 {offsets = [1, 2, 0], sizes = [8, 16, 4], strides = [1, 1, 1]} : vector<10x18x4xf32> to vector<8x16x4xf32>
    %16 = vector.shape_cast %15 : vector<8x16x4xf32> to vector<128x4xf32>
    %17 = vector.extract_strided_slice %4 {offsets = [2, 0, 0], sizes = [8, 16, 4], strides = [1, 1, 1]} : vector<10x18x4xf32> to vector<8x16x4xf32>
    %18 = vector.shape_cast %17 : vector<8x16x4xf32> to vector<128x4xf32>
    %19 = vector.extract_strided_slice %4 {offsets = [2, 1, 0], sizes = [8, 16, 4], strides = [1, 1, 1]} : vector<10x18x4xf32> to vector<8x16x4xf32>
    %20 = vector.shape_cast %19 : vector<8x16x4xf32> to vector<128x4xf32>
    %21 = vector.extract_strided_slice %4 {offsets = [2, 2, 0], sizes = [8, 16, 4], strides = [1, 1, 1]} : vector<10x18x4xf32> to vector<8x16x4xf32>
    %22 = vector.shape_cast %21 : vector<8x16x4xf32> to vector<128x4xf32>
    %23 = tpu.concatenate %6, %8, %10, %12, %14, %16, %18, %20, %22 in 1 : vector<128x4xf32>, vector<128x4xf32>, vector<128x4xf32>, vector<128x4xf32>, vector<128x4xf32>, vector<128x4xf32>, vector<128x4xf32>, vector<128x4xf32>, vector<128x4xf32> -> vector<128x36xf32>
    %24 = arith.truncf %23 : vector<128x36xf32> to vector<128x36xbf16>
    %cst = arith.constant dense<0.000000e+00> : vector<128x4xf32>
    %25 = tpu.matmul %24, %2, %cst {dimension_numbers = #tpu.dot_dimension_numbers<[1], [0], [0], [1], [0, 0, 1, 1], [], []>} : vector<128x36xbf16>, vector<36x4xbf16>, vector<128x4xf32> -> vector<128x4xf32>
    %26 = vector.broadcast %3 : vector<1x4xf32> to vector<128x4xf32>
    %27 = arith.addf %25, %26 : vector<128x4xf32>
    %cst_8 = arith.constant 0.000000e+00 : f32
    %28 = vector.broadcast %cst_8 : f32 to vector<128x4xf32>
    %29 = arith.maximumf %27, %28 : vector<128x4xf32>
    %c0_9 = arith.constant 0 : index
    %c0_10 = arith.constant 0 : index
    %c0_11 = arith.constant 0 : index
    %c0_12 = arith.constant 0 : index
    %30 = vector.load %arg5[%c0_9, %c0_10, %c0_11, %c0_12] : memref<1x1x128x4xf32, #tpu.memory_space<vmem>>, vector<1x1x128x4xf32>
    %31 = vector.shape_cast %30 : vector<1x1x128x4xf32> to vector<128x4xf32>
    %32 = vector.shape_cast %29 : vector<128x4xf32> to vector<1x1x128x4xf32>
    tpu.vector_store %arg5[%c0_9, %c0_10, %c0_11, %c0_12], %32 {strides = array<i32>} : memref<1x1x128x4xf32, #tpu.memory_space<vmem>>, vector<1x1x128x4xf32>,
    %cst_13 = arith.constant dense<0.000000e+00> : vector<4xf32>
    %33 = vector.multi_reduction <add>, %29, %cst_13 [0] : vector<128x4xf32> to vector<4xf32>
    %34 = vector.shape_cast %33 : vector<4xf32> to vector<1x4xf32>
    %35 = arith.mulf %29, %29 : vector<128x4xf32>
    %cst_14 = arith.constant dense<0.000000e+00> : vector<4xf32>
    %36 = vector.multi_reduction <add>, %35, %cst_14 [0] : vector<128x4xf32> to vector<4xf32>
    %37 = vector.shape_cast %36 : vector<4xf32> to vector<1x4xf32>
    %38 = tpu.concatenate %34, %37 in 0 : vector<1x4xf32>, vector<1x4xf32> -> vector<2x4xf32>
    %c0_i32 = arith.constant 0 : i32
    %39 = arith.cmpi eq, %arg0, %c0_i32 : i32
    %c0_i32_15 = arith.constant 0 : i32
    %40 = arith.cmpi eq, %arg1, %c0_i32_15 : i32
    %41 = arith.andi %39, %40 : i1
    %42 = arith.extui %41 : i1 to i32
    %c0_i32_16 = arith.constant 0 : i32
    %43 = arith.cmpi ne, %42, %c0_i32_16 : i32
    scf.if %43 {
      %c0_18 = arith.constant 0 : index
      %c0_19 = arith.constant 0 : index
      %47 = vector.load %arg6[%c0_18, %c0_19] : memref<2x4xf32, #tpu.memory_space<vmem>>, vector<2x4xf32>
      tpu.vector_store %arg6[%c0_18, %c0_19], %38 {strides = array<i32>} : memref<2x4xf32, #tpu.memory_space<vmem>>, vector<2x4xf32>,
    } else {
    }
    %true = arith.constant true
    %44 = arith.xori %41, %true : i1
    %45 = arith.extui %44 : i1 to i32
    %c0_i32_17 = arith.constant 0 : i32
    %46 = arith.cmpi ne, %45, %c0_i32_17 : i32
    scf.if %46 {
      %c0_18 = arith.constant 0 : index
      %c0_19 = arith.constant 0 : index
      %47 = vector.load %arg6[%c0_18, %c0_19] : memref<2x4xf32, #tpu.memory_space<vmem>>, vector<2x4xf32>
      %48 = arith.addf %47, %38 : vector<2x4xf32>
      %c0_20 = arith.constant 0 : index
      %c0_21 = arith.constant 0 : index
      %49 = vector.load %arg6[%c0_20, %c0_21] : memref<2x4xf32, #tpu.memory_space<vmem>>, vector<2x4xf32>
      tpu.vector_store %arg6[%c0_20, %c0_21], %48 {strides = array<i32>} : memref<2x4xf32, #tpu.memory_space<vmem>>, vector<2x4xf32>,
    } else {
    }
    return
  }
  func.func @transform_0(%arg0: i32, %arg1: i32) -> (i32, i32, i32, i32, i32) {
    %c0_i32 = arith.constant 0 : i32
    %c0_i32_0 = arith.constant 0 : i32
    %c0_i32_1 = arith.constant 0 : i32
    %c0_i32_2 = arith.constant 0 : i32
    return %arg0, %arg1, %c0_i32, %c0_i32_0, %c0_i32_1 : i32, i32, i32, i32, i32
  }
  func.func @transform_1(%arg0: i32, %arg1: i32) -> (i32, i32) {
    %c0_i32 = arith.constant 0 : i32
    %c0_i32_0 = arith.constant 0 : i32
    %c0_i32_1 = arith.constant 0 : i32
    return %c0_i32, %c0_i32_0 : i32, i32
  }
  func.func @transform_2(%arg0: i32, %arg1: i32) -> (i32, i32) {
    %c0_i32 = arith.constant 0 : i32
    %c0_i32_0 = arith.constant 0 : i32
    %c0_i32_1 = arith.constant 0 : i32
    return %c0_i32, %c0_i32_0 : i32, i32
  }
  func.func @transform_3(%arg0: i32, %arg1: i32) -> (i32, i32, i32, i32) {
    %c0_i32 = arith.constant 0 : i32
    %c0_i32_0 = arith.constant 0 : i32
    %c0_i32_1 = arith.constant 0 : i32
    return %arg0, %arg1, %c0_i32, %c0_i32_0 : i32, i32, i32, i32
  }
  func.func @transform_4(%arg0: i32, %arg1: i32) -> (i32, i32) {
    %c0_i32 = arith.constant 0 : i32
    %c0_i32_0 = arith.constant 0 : i32
    %c0_i32_1 = arith.constant 0 : i32
    return %c0_i32, %c0_i32_0 : i32, i32
  }
}

module attributes {stable_mosaic.version = 11 : i64} {
  func.func @_bn_residual_kernel(%arg0: i32, %arg1: i32, %arg2: memref<1x1x128x4xf32, #tpu.memory_space<vmem>>, %arg3: memref<1x1x128x4xf32, #tpu.memory_space<vmem>>, %arg4: memref<1x4xf32, #tpu.memory_space<vmem>>, %arg5: memref<1x4xf32, #tpu.memory_space<vmem>>, %arg6: memref<1x1x128x4xf32, #tpu.memory_space<vmem>>) attributes {dimension_semantics = [#tpu.dimension_semantics<parallel>, #tpu.dimension_semantics<parallel>], iteration_bounds = array<i64: 2, 2>, scalar_prefetch = 0 : i64, scratch_operands = 0 : i64, tpu.core_type = #tpu.core_type<tc>, window_params = [{transform_indices = @transform_0, window_bounds = array<i64: 1, 1, 128, 4>}, {transform_indices = @transform_1, window_bounds = array<i64: 1, 1, 128, 4>}, {pipeline_mode = #tpu.pipeline_mode<synchronous>, transform_indices = @transform_2, window_bounds = array<i64: 1, 4>}, {pipeline_mode = #tpu.pipeline_mode<synchronous>, transform_indices = @transform_3, window_bounds = array<i64: 1, 4>}, {transform_indices = @transform_4, window_bounds = array<i64: 1, 1, 128, 4>}]} {
    %c0 = arith.constant 0 : index
    %c0_0 = arith.constant 0 : index
    %c0_1 = arith.constant 0 : index
    %c0_2 = arith.constant 0 : index
    %0 = vector.load %arg2[%c0, %c0_0, %c0_1, %c0_2] : memref<1x1x128x4xf32, #tpu.memory_space<vmem>>, vector<1x1x128x4xf32>
    %1 = vector.shape_cast %0 : vector<1x1x128x4xf32> to vector<128x4xf32>
    %c0_3 = arith.constant 0 : index
    %c0_4 = arith.constant 0 : index
    %2 = vector.load %arg4[%c0_3, %c0_4] : memref<1x4xf32, #tpu.memory_space<vmem>>, vector<1x4xf32>
    %3 = vector.broadcast %2 : vector<1x4xf32> to vector<128x4xf32>
    %4 = arith.mulf %1, %3 : vector<128x4xf32>
    %c0_5 = arith.constant 0 : index
    %c0_6 = arith.constant 0 : index
    %5 = vector.load %arg5[%c0_5, %c0_6] : memref<1x4xf32, #tpu.memory_space<vmem>>, vector<1x4xf32>
    %6 = vector.broadcast %5 : vector<1x4xf32> to vector<128x4xf32>
    %7 = arith.addf %4, %6 : vector<128x4xf32>
    %c0_7 = arith.constant 0 : index
    %c0_8 = arith.constant 0 : index
    %c0_9 = arith.constant 0 : index
    %c0_10 = arith.constant 0 : index
    %8 = vector.load %arg3[%c0_7, %c0_8, %c0_9, %c0_10] : memref<1x1x128x4xf32, #tpu.memory_space<vmem>>, vector<1x1x128x4xf32>
    %9 = vector.shape_cast %8 : vector<1x1x128x4xf32> to vector<128x4xf32>
    %10 = arith.addf %7, %9 : vector<128x4xf32>
    %c0_11 = arith.constant 0 : index
    %c0_12 = arith.constant 0 : index
    %c0_13 = arith.constant 0 : index
    %c0_14 = arith.constant 0 : index
    %11 = vector.load %arg6[%c0_11, %c0_12, %c0_13, %c0_14] : memref<1x1x128x4xf32, #tpu.memory_space<vmem>>, vector<1x1x128x4xf32>
    %12 = vector.shape_cast %11 : vector<1x1x128x4xf32> to vector<128x4xf32>
    %13 = vector.shape_cast %10 : vector<128x4xf32> to vector<1x1x128x4xf32>
    tpu.vector_store %arg6[%c0_11, %c0_12, %c0_13, %c0_14], %13 {strides = array<i32>} : memref<1x1x128x4xf32, #tpu.memory_space<vmem>>, vector<1x1x128x4xf32>,
    return
  }
  func.func @transform_0(%arg0: i32, %arg1: i32) -> (i32, i32, i32, i32) {
    %c0_i32 = arith.constant 0 : i32
    %c0_i32_0 = arith.constant 0 : i32
    %c0_i32_1 = arith.constant 0 : i32
    return %arg0, %arg1, %c0_i32, %c0_i32_0 : i32, i32, i32, i32
  }
  func.func @transform_1(%arg0: i32, %arg1: i32) -> (i32, i32, i32, i32) {
    %c0_i32 = arith.constant 0 : i32
    %c0_i32_0 = arith.constant 0 : i32
    %c0_i32_1 = arith.constant 0 : i32
    return %arg0, %arg1, %c0_i32, %c0_i32_0 : i32, i32, i32, i32
  }
  func.func @transform_2(%arg0: i32, %arg1: i32) -> (i32, i32) {
    %c0_i32 = arith.constant 0 : i32
    %c0_i32_0 = arith.constant 0 : i32
    %c0_i32_1 = arith.constant 0 : i32
    return %c0_i32, %c0_i32_0 : i32, i32
  }
  func.func @transform_3(%arg0: i32, %arg1: i32) -> (i32, i32) {
    %c0_i32 = arith.constant 0 : i32
    %c0_i32_0 = arith.constant 0 : i32
    %c0_i32_1 = arith.constant 0 : i32
    return %c0_i32, %c0_i32_0 : i32, i32
  }
  func.func @transform_4(%arg0: i32, %arg1: i32) -> (i32, i32, i32, i32) {
    %c0_i32 = arith.constant 0 : i32
    %c0_i32_0 = arith.constant 0 : i32
    %c0_i32_1 = arith.constant 0 : i32
    return %arg0, %arg1, %c0_i32, %c0_i32_0 : i32, i32, i32, i32
  }
}

</mosaic_0001>

<bundles_post_ra>
// kernel: residual_cnn_block.3
= control target key start
LH: loop header
LB: loop body
LE: loop exit
PB: predicated region body
PF: predicated region fallthrough
CT: control target
= control target key end

     0   :  { %s1737_s12 = smov 0   ;;  %s1739_s13 = smov 0   ;;  %s2453_s0 = inlined_call_operand.vmem [shape: bf16[2,2,10,18,4], index: 0, kind: input, shape index: {}]   ;;  %s2454_s1 = inlined_call_operand.vmem [shape: bf16[36,4], index: 1, kind: input, shape index: {}]   ;;  %s2455_s2 = inlined_call_operand.vmem [shape: f32[1,4], index: 2, kind: input, shape index: {}]   ;;  %s2456_s3 = inlined_call_operand.vmem [shape: f32[2,2,128,4], index: 3, kind: output, shape index: {}]  }
   0x1   :  { %s1741_s14 = smov 0   ;;  %s1743_s15 = smov 0  }
   0x2   :  { %s1745_s16 = smov 0  }
   0x3 LB: > { %s22_s17 = sadd.s32 1, %s1699_s14  ;;  %s25_s18 = sadd.s32 1, %s1703_s15  ;;  %s1707_s16 = sphi %s1745_s16, %s13_s16   ;;  %s1703_s15 = sphi %s1743_s15, %s2460_s15   ;;  %s1699_s14 = sphi %s1741_s14, %s2459_s14   ;;  %s1695_s13 = sphi %s1739_s13, %s2458_s13   ;;  %s1691_s12 = sphi %s1737_s12, %s2457_s12  }
   0x4   : > { %p23_p0 = scmp.ge.s32.totalorder %s22_s17, 2  ;;  %p1212_p1 = scmp.ge.s32.totalorder %s1707_s16, 1 }
   0x5   : > { %p157_p2 = scmp.lt.s32.totalorder %s1707_s16, 5 }
   0x6   : > { %s2462_s17 = smov (%p23_p0, %s22_s17), 0  ;;  %s2464_s18 = smov (!%p23_p0, %s25_s18), %s1703_s15 }
   0x7   : > { %p158_p3 = pnand %p1212_p1, %p157_p2  ;;  %p27_p4 = scmp.ge.s32.totalorder %s2464_s18, 2 }
   0x8   : > { %p189_p5 = scmp.lt.s32.totalorder (!%p158_p3), %s1695_s13, 1  ;;  %p191_p6 = scmp.lt.s32.totalorder (!%p158_p3), %s1691_s12, 1  ;;  %vm298_vm0 = vcmask (!%p158_p3), 1046528   ;;  %vm339_vm1 = vcmask (!%p158_p3), 1045504   ;;  %vm980_vm2 = vcmask (!%p158_p3), 1041408   ;;  %vm790_vm3 = vcmask (!%p158_p3), 31744  }
   0x9   : > { %s2466_s18 = smov (%p27_p4, %s2464_s18), 0  ;;  %161 = sbr.rel (%p158_p3) target bundleno = 498 (0x1f2), region = 32 }
   0xa   : > { %s1709_s26 = smov (!%p158_p3), 4   ;;  %s1710_s27 = smov (!%p158_p3), 8   ;;  %vm807_vm4 = vcmask (!%p158_p3), 64512   ;;  %vm824_vm5 = vcmask (!%p158_p3), 97280   ;;  %vm841_vm6 = vcmask (!%p158_p3), 130048   ;;  %vm858_vm7 = vcmask (!%p158_p3), 162816  }
   0xb   : > { %s1711_s28 = smov (!%p158_p3), 12   ;;  %s1712_s29 = smov (!%p158_p3), 16   ;;  %vm875_vm8 = vcmask (!%p158_p3), 195584   ;;  %vm892_vm9 = vcmask (!%p158_p3), 228352   ;;  %vm909_vm10 = vcmask (!%p158_p3), 261120   ;;  %vm955_vm11 = vcmask (!%p158_p3), 293888  }
   0xc   : > { %s1713_s30 = smov (!%p158_p3), 20   ;;  %s1714_s4 = smov (!%p158_p3), 24  }
   0xd   : > { %s1715_s7 = smov (!%p158_p3), 28  }
  0x10   : > { %s2468_s13 = smov (!%p189_p5, %s1695_s13), 1  ;;  %s2470_s12 = smov (!%p191_p6, %s1691_s12), 1 }
  0x11   : > { %s1297_s19 = smul.u32 60, %s2468_s13 }
  0x12   : > { %s1296_s20 = smul.u32 30, %s2470_s12 }
  0x14   : > { %s195_s21 = sadd.s32 %s1297_s19, %s1296_s20  ;;  %s1716_s19 = smov 32  }
  0x15   : > { %s1213_s22 = sshll.u32 %s195_s21, 2  ;;  %s1214_s20 = sshll.u32 %s2470_s12, 4 }
  0x16   : > { %s1776_s25 = scalar_lea.vmem %s2453_s0, %s1213_s22  ;;  %s1215_s21 = sshll.u32 %s2468_s13, 5 }
  0x17   : > { %v211_v0 = vld [vmem:[%s1776_s25 + $0xc] sm:$0xff]   ;;  %v1780_v1 = vld [vmem:[%s1776_s25 + $0x14] sm:$0x1]  ;;  %v1232_v2 = vld [vmem:[%s1776_s25] sm:$0xff]   ;;  %s204_s22 = sadd.s32 %s1215_s21, %s1214_s20 }
  0x18   : > { %v1783_v3 = vunpack.c.l.bf16 %v211_v0  ;;  %v1785_v4 = vunpack.c.h.bf16 %v211_v0  ;;  %v249_v5 = vunpack.c.l.bf16 %v1780_v1  ;;  %v1788_v6 = vunpack.c.l.bf16 %v1232_v2  ;;  %v210_v7 = vld [vmem:[%s1776_s25 + $0x8] sm:$0x1]  ;;  %v223_v8 = vld [vmem:[%s1776_s25 + $0x3c] sm:$0xff]   ;;  %v225_v9 = vld [vmem:[%s1776_s25 + $0x44] sm:$0x1] }
  0x19   : > { %v1793_v10 = vunpack.c.h.bf16 %v1232_v2  ;;  %v246_v11 = vunpack.c.l.bf16 %v210_v7  ;;  %v1795_v12 = vunpack.c.l.bf16 %v223_v8  ;;  %v1797_v13 = vunpack.c.h.bf16 %v223_v8  ;;  %v1252_v14 = vld [vmem:[%s1776_s25 + $0x30] sm:$0xff]   ;;  %v222_v27 = vld [vmem:[%s1776_s25 + $0x38] sm:$0x1]  ;;  %v1253_v7 = vld [vmem:[%s1776_s25 + $0x48] sm:$0xff]  }
  0x1a   : > { %v304_v15 = vrot.slane %v1783_v3, 1  ;;  %v305_v16 = vrot.slane %v1785_v4, 1  ;;  %v307_v17 = vrot.slane %v249_v5, 1  ;;  %v299_v18 = vrot.slane %v1788_v6, 1 }
  0x1b   : > { %v300_v19 = vrot.slane %v1793_v10, 1  ;;  %v302_v20 = vrot.slane %v246_v11, 1  ;;  %v261_v21 = vunpack.c.l.bf16 %v225_v9  ;;  %v324_v22 = vrot.slane %v1795_v12, 1 }
  0x1c   : > { %v306_v23 = vsel %vm298_vm0, %v304_v15, %v305_v16  ;;  %v308_v24 = vsel %vm298_vm0, %v305_v16, %v307_v17  ;;  %v325_v25 = vrot.slane %v1797_v13, 1  ;;  %v1808_v26 = vunpack.c.l.bf16 %v1252_v14  ;;  %v1251_v15 = vld [vmem:[%s1776_s25 + $0x18] sm:$0xff]   ;;  %v216_v17 = vld [vmem:[%s1776_s25 + $0x20] sm:$0x1] }
  0x1d   : > { %v1811_v28 = vpack.i.bf16 %v308_v24, %v306_v23  ;;  %v301_v29 = vsel %vm298_vm0, %v299_v18, %v300_v19  ;;  %v303_v30 = vsel %vm298_vm0, %v300_v19, %v302_v20  ;;  %v327_v33 = vrot.slane %v261_v21, 1 }
  0x1e   : > { %v1346_v31 = vpack.i.bf16 %v303_v30, %v301_v29  ;;  %v326_v32 = vsel %vm298_vm0, %v324_v22, %v325_v25  ;;  %v1816_v34 = vunpack.c.h.bf16 %v1252_v14  ;;  %v258_v35 = vunpack.c.l.bf16 %v222_v27 }
  0x1f   : > { %1357 = vrot.lane.b32.xlu1 %v1811_v28, %s1709_s26  ;;  %v319_v36 = vrot.slane %v1808_v26, 1  ;;  %v360_v37 = vrot.slane %v1808_v26, 2  ;;  %v340_v38 = vrot.slane %v1788_v6, 2  ;;  %v328_v39 = vsel %vm298_vm0, %v325_v25, %v327_v33 }
  0x20   : > { %1347 = vrot.lane.b32.xlu0 %v1346_v31, %s1709_s26  ;;  %v320_v40 = vrot.slane %v1816_v34, 1  ;;  %v361_v41 = vrot.slane %v1816_v34, 2  ;;  %v341_v42 = vrot.slane %v1793_v10, 2  ;;  %v1828_v43 = vpack.i.bf16 %v328_v39, %v326_v32 }
  0x21   : > { %v322_v44 = vrot.slane %v258_v35, 1  ;;  %v363_v45 = vrot.slane %v258_v35, 2  ;;  %v343_v46 = vrot.slane %v246_v11, 2  ;;  %v365_v50 = vrot.slane %v1795_v12, 2 }
  0x22   : > { %v321_v47 = vsel %vm298_vm0, %v319_v36, %v320_v40  ;;  %v362_v48 = vsel %vm339_vm1, %v360_v37, %v361_v41  ;;  %v342_v49 = vsel %vm339_vm1, %v340_v38, %v341_v42  ;;  %v366_v54 = vrot.slane %v1797_v13, 2 }
  0x23   : > { %1362 = vrot.lane.b32.xlu1 %v1828_v43, %s1709_s26  ;;  %v323_v51 = vsel %vm298_vm0, %v320_v40, %v322_v44  ;;  %v364_v52 = vsel %vm339_vm1, %v361_v41, %v363_v45  ;;  %v344_v53 = vsel %vm339_vm1, %v341_v42, %v343_v46  ;;  %v368_v57 = vrot.slane %v261_v21, 2  ;;  %v1254_v45 = vld [vmem:[%s1776_s25 + $0x60] sm:$0xff]  }
  0x24   : > { %v1840_v55 = vpack.i.bf16 %v323_v51, %v321_v47  ;;  %v1842_v56 = vpack.i.bf16 %v364_v52, %v362_v48  ;;  %v367_v58 = vsel %vm339_vm1, %v365_v50, %v366_v54  ;;  %v345_v59 = vrot.slane %v1783_v3, 2  ;;  %v229_v52 = vld [vmem:[%s1776_s25 + $0x54] sm:$0xff]  }
  0x25   : > { %v346_v60 = vrot.slane %v1785_v4, 2  ;;  %v348_v61 = vrot.slane %v249_v5, 2  ;;  %v1366_v62 = vpack.i.bf16 %v344_v53, %v342_v49  ;;  %v369_v63 = vsel %vm339_vm1, %v366_v54, %v368_v57  ;;  %v228_v5 = vld [vmem:[%s1776_s25 + $0x50] sm:$0x1]  ;;  %v234_v49 = vld [vmem:[%s1776_s25 + $0x68] sm:$0x1] }
  0x26   : > { %1352 = vrot.lane.b32.xlu0 %v1840_v55, %s1709_s26  ;;  %v1852_v0 = vpack.i.bf16 %v369_v63, %v367_v58  ;;  %v1865_v9 = vpack.i.bf16 %v1797_v13, %v1795_v12  ;;  %v1867_v11 = vunpack.c.l.bf16 %v1253_v7  ;;  %v1869_v14 = vunpack.c.h.bf16 %v1253_v7  ;;  %v217_v58 = vld [vmem:[%s1776_s25 + $0x24] sm:$0xff]  }
  0x27   : > { %1372 = vrot.lane.b32.xlu1 %v1842_v56, %s1710_s27  ;;  %v347_v1 = vsel %vm339_vm1, %v345_v59, %v346_v60  ;;  %v349_v2 = vsel %vm339_vm1, %v346_v60, %v348_v61  ;;  %v264_v16 = vunpack.c.l.bf16 %v228_v5  ;;  %v1381_v18 = vpack.i.bf16 %v1785_v4, %v1783_v3  ;;  %v235_v61 = vld [vmem:[%s1776_s25 + $0x6c] sm:$0xff]  }
  0x28   : > { %v1859_v8 = vpack.i.bf16 %v349_v2, %v347_v1  ;;  %v1877_v19 = vunpack.c.l.bf16 %v1251_v15  ;;  %v1879_v20 = vunpack.c.h.bf16 %v1251_v15  ;;  %v1885_v21 = vpack.i.bf16 %v1869_v14, %v1867_v11 }
  0x29   : > { %v252_v22 = vunpack.c.l.bf16 %v216_v17  ;;  %v329_v23 = vrot.slane %v1867_v11, 1  ;;  %v330_v24 = vrot.slane %v1869_v14, 1  ;;  %v332_v25 = vrot.slane %v264_v16, 1 }
  0x2a   : > { %1367 = vrot.lane.b32.xlu0 %v1366_v62, %s1710_s27  ;;  %v1892_v27 = vpack.i.bf16 %v1879_v20, %v1877_v19  ;;  %v309_v29 = vrot.slane %v1877_v19, 1  ;;  %v310_v30 = vrot.slane %v1879_v20, 1  ;;  %v370_v35 = vrot.slane %v1867_v11, 2 }
  0x2b   : > { %1387 = vrot.lane.b32.xlu1 %v1852_v0, %s1710_s27  ;;  %v312_v31 = vrot.slane %v252_v22, 1  ;;  %v331_v32 = vsel %vm298_vm0, %v329_v23, %v330_v24  ;;  %v333_v33 = vsel %vm298_vm0, %v330_v24, %v332_v25  ;;  %v371_v36 = vrot.slane %v1869_v14, 2  ;;  %v237_v24 = vld [vmem:[%s1776_s25 + $0x74] sm:$0x1] }
  0x2c   : > { %v373_v37 = vrot.slane %v264_v16, 2  ;;  %v1906_v38 = vpack.i.bf16 %v333_v33, %v331_v32  ;;  %v311_v39 = vsel %vm298_vm0, %v309_v29, %v310_v30  ;;  %v350_v41 = vrot.slane %v1877_v19, 2 }
  0x2d   : > { %v313_v40 = vsel %vm298_vm0, %v310_v30, %v312_v31  ;;  %v351_v42 = vrot.slane %v1879_v20, 2  ;;  %v353_v44 = vrot.slane %v252_v22, 2  ;;  %v372_v47 = vsel %vm339_vm1, %v370_v35, %v371_v36 }
  0x2e   : > { %1377 = vrot.lane.b32.xlu0 %v1859_v8, %s1710_s27  ;;  %v1915_v46 = vpack.i.bf16 %v313_v40, %v311_v39  ;;  %v374_v48 = vsel %vm339_vm1, %v371_v36, %v373_v37  ;;  %v1925_v53 = vunpack.c.l.bf16 %v1254_v45  ;;  %v1927_v54 = vunpack.c.h.bf16 %v1254_v45  ;;  %v219_v36 = vld [vmem:[%s1776_s25 + $0x2c] sm:$0x1] }
  0x2f   : > { %1392 = vrot.lane.b32.xlu1 %v1865_v9, %s1711_s28  ;;  %v352_v50 = vsel %vm339_vm1, %v350_v41, %v351_v42  ;;  %v354_v51 = vsel %vm339_vm1, %v351_v42, %v353_v44  ;;  %v270_v57 = vunpack.c.l.bf16 %v234_v49  ;;  %v1941_v63 = vunpack.c.l.bf16 %v229_v52 }
  0x30   : > { %v383_v59 = vrot.slane %v1925_v53, 1  ;;  %v384_v60 = vrot.slane %v1927_v54, 1  ;;  %v1939_v62 = vpack.i.bf16 %v354_v51, %v352_v50  ;;  %v388_v2 = vrot.slane %v1925_v53, 2 }
  0x31   : > { %v386_v1 = vrot.slane %v270_v57, 1  ;;  %v389_v5 = vrot.slane %v1927_v54, 2  ;;  %v391_v15 = vrot.slane %v270_v57, 2  ;;  %v1946_v16 = vunpack.c.h.bf16 %v229_v52 }
  0x32   : > { %1382 = vrot.lane.b32.xlu0 %v1381_v18, %s1711_s28  ;;  %v385_v7 = vsel %vm298_vm0, %v383_v59, %v384_v60  ;;  %v1948_v17 = vunpack.c.l.bf16 %v217_v58  ;;  %v231_v18 = vld [vmem:[%s1776_s25 + $0x5c] sm:$0x1]  ;;  %v1952_v23 = vunpack.c.l.bf16 %v235_v61  ;;  %v1961_v31 = vunpack.c.h.bf16 %v235_v61  ;;  %s1216_s25 = sshll.u32 %s204_s22, 3 }
  0x33   : > { %1402 = vrot.lane.b32.xlu1 %v1885_v21, %s1711_s28  ;;  %v387_v22 = vsel %vm298_vm0, %v384_v60, %v386_v1  ;;  %v390_v29 = vsel %vm339_vm1, %v388_v2, %v389_v5  ;;  %v392_v30 = vsel %vm339_vm1, %v389_v5, %v391_v15  ;;  %v1965_v32 = vunpack.c.h.bf16 %v217_v58 }
  0x34   : > { %v1957_v25 = vpack.i.bf16 %v387_v22, %v385_v7  ;;  %v1967_v33 = vpack.i.bf16 %v392_v30, %v390_v29  ;;  %v267_v35 = vunpack.c.l.bf16 %v231_v18  ;;  %v273_v37 = vunpack.c.l.bf16 %v237_v24  ;;  %v1667_v24 = vld [vmem:[%s2454_s1 + $0x8] sm:$0xff]  }
  0x35   : > { %v397_v39 = vrot.slane %v1961_v31, 1  ;;  %v334_v40 = vrot.slane %v1941_v63, 1  ;;  %v401_v44 = vrot.slane %v1952_v23, 2  ;;  %v402_v45 = vrot.slane %v1961_v31, 2 }
  0x36   : > { %1397 = vrot.lane.b32.xlu0 %v1892_v27, %s1711_s28  ;;  %v399_v42 = vrot.slane %v273_v37, 1  ;;  %v404_v49 = vrot.slane %v273_v37, 2  ;;  %v335_v50 = vrot.slane %v1946_v16, 1  ;;  %v337_v51 = vrot.slane %v267_v35, 1 }
  0x37   : > { %1412 = vrot.lane.b32.xlu1 %v1828_v43, %s1712_s29  ;;  %v1991_v57 = vsel %vm339_vm1, %v401_v44, %v402_v45  ;;  %v1456_v59 = vpack.i.bf16 %v1965_v32, %v1948_v17  ;;  %v314_v61 = vrot.slane %v1948_v17, 1  ;;  %v315_v1 = vrot.slane %v1965_v32, 1 }
  0x38   : > { %v1988_v52 = vsel %vm298_vm0, %v397_v39, %v399_v42  ;;  %v336_v7 = vsel %vm298_vm0, %v334_v40, %v335_v50  ;;  %v338_v5 = vsel %vm298_vm0, %v335_v50, %v337_v51  ;;  %v375_v30 = vrot.slane %v1941_v63, 2 }
  0x39   : > { %v1481_v15 = vpack.i.bf16 %v338_v5, %v336_v7  ;;  %v316_v18 = vsel %vm298_vm0, %v314_v61, %v315_v1  ;;  %v378_v37 = vrot.slane %v267_v35, 2  ;;  %v355_v40 = vrot.slane %v1948_v17, 2 }
  0x3a   : > { %1407 = vrot.lane.b32.xlu0 %v1811_v28, %s1712_s29  ;;  %v1929_v28 = vpack.i.bf16 %v374_v48, %v372_v47  ;;  %v1984_v47 = vpack.i.bf16 %v1946_v16, %v1941_v63  ;;  %v255_v48 = vunpack.c.l.bf16 %v219_v36  ;;  %v376_v36 = vrot.slane %v1946_v16, 2 }
  0x3b   : > { %1422 = vrot.lane.b32.xlu1 %v1906_v38, %s1712_s29  ;;  %v356_v42 = vrot.slane %v1965_v32, 2 }
  0x3c   : > { %v317_v2 = vrot.slane %v255_v48, 1  ;;  %v358_v35 = vrot.slane %v255_v48, 2  ;;  %v377_v44 = vsel %vm339_vm1, %v375_v30, %v376_v36 }
  0x3d   : > { %v357_v50 = vsel %vm339_vm1, %v355_v40, %v356_v42 }
  0x3e   : > { %1417 = vrot.lane.b32.xlu0 %v1915_v46, %s1712_s29  ;;  %v318_v22 = vsel %vm298_vm0, %v315_v1, %v317_v2  ;;  %v359_v51 = vsel %vm339_vm1, %v356_v42, %v358_v35 }
  0x3f   : > { %1432 = vrot.lane.b32.xlu1 %v1852_v0, %s1713_s30  ;;  %v1476_v29 = vpack.i.bf16 %v318_v22, %v316_v18  ;;  %v1506_v48 = vpack.i.bf16 %v359_v51, %v357_v50 }
  0x42   : > { %1427 = vrot.lane.b32.xlu0 %v1859_v8, %s1713_s30  ;;  %v396_v8 = vrot.slane %v1952_v23, 1 }
  0x43   : > { %1442 = vrot.lane.b32.xlu1 %v1929_v28, %s1713_s30 }
  0x44   : > { %v1976_v41 = vsel %vm298_vm0, %v396_v8, %v397_v39  ;;  %v1668_v8 = vld [vmem:[%s2454_s1 + $0x10] ss:$0 sps:$4 sm:$0x33]  }
  0x45   : > { %v1641_v58 = vpack.i.bf16 %v1988_v52, %v1976_v41  ;;  %v982_v39 = vsel %vm980_vm2, %v1668_v8, 0 }
  0x46   : > { %1437 = vrot.lane.b32.xlu0 %v1939_v62, %s1713_s30 }
  0x47   : > { %1452 = vrot.lane.b32.xlu1 %v1885_v21, %s1714_s4  ;;  %v1996_v21 = vsel %vm339_vm1, %v402_v45, %v404_v49  ;;  %v379_v45 = vsel %vm339_vm1, %v376_v36, %v378_v37 }
  0x48   : > { %v1661_v60 = vpack.i.bf16 %v1996_v21, %v1991_v57  ;;  %v1511_v49 = vpack.i.bf16 %v379_v45, %v377_v44 }
  0x4a   : > { %1447 = vrot.lane.b32.xlu0 %v1892_v27, %s1714_s4  ;;  %v1666_v27 = vld [vmem:[%s2454_s1] sm:$0xff]  }
  0x4b   : > { %1462 = vrot.lane.b32.xlu1 %v1984_v47, %s1714_s4  ;;  %1266 = vmatprep.subr.bf16.mxu0 %v1666_v27 }
  0x4c   : > { %1288 = vmatprep.subr.bf16.mxu1 %v1666_v27  ;;  %1267 = vmatpush3.bf16.msra.mxu0 %v1666_v27 }
  0x4d   : > { %1291 = vmatpush3.bf16.msra.mxu1 %v1666_v27  ;;  %1268 = vmatprep.subr.bf16.mxu0 %v1667_v24 }
  0x4e   : > { %1457 = vrot.lane.b32.xlu0 %v1456_v59, %s1714_s4  ;;  %1289 = vmatprep.subr.bf16.mxu1 %v1667_v24 }
  0x4f   : > { %1472 = vrot.lane.b32.xlu1 %v1906_v38, %s1715_s7 }
  0x50   : > { %1269 = vmatpush3.bf16.msra.mxu0 %v1667_v24 }
  0x51   : > { %1292 = vmatpush3.bf16.msra.mxu1 %v1667_v24  ;;  %1294 = vmatprep.subr.msk.bf16.mxu0 %vm980_vm2, %v1668_v8 }
  0x52   : > { %1467 = vrot.lane.b32.xlu0 %v1915_v46, %s1715_s7  ;;  %1295 = vmatprep.subr.msk.bf16.mxu1 %vm980_vm2, %v1668_v8 }
  0x53   : > { %1482 = vrot.lane.b32.xlu1 %v1481_v15, %s1715_s7 }
  0x54   : > { %1271 = vmatpush3.bf16.msra.mxu0 %v982_v39 }
  0x55   : > { %1293 = vmatpush3.bf16.msra.mxu1 %v982_v39 }
  0x56   : > { %1477 = vrot.lane.b32.xlu0 %v1476_v29, %s1715_s7 }
  0x57   : > { %1492 = vrot.lane.b32.xlu1 %v1929_v28, %s1716_s19 }
  0x5a   : > { %1487 = vrot.lane.b32.xlu0 %v1939_v62, %s1716_s19 }
  0x5b   : > { %1502 = vrot.lane.b32.xlu1 %v1906_v38, %s1709_s26  ;;  %v1561_v38 = vpack.i.bf16 %v1927_v54, %v1925_v53  ;;  %v1621_v53 = vpack.i.bf16 %v1961_v31, %v1952_v23 }
  0x5e   : > { %1497 = vrot.lane.b32.xlu0 %v1915_v46, %s1709_s26  ;;  %v1556_v46 = vpack.i.bf16 %v1816_v34, %v1808_v26 }
  0x5f   : > { %1512 = vrot.lane.b32.xlu1 %v1511_v49, %s1716_s19 }
  0x62   : > { %1507 = vrot.lane.b32.xlu0 %v1506_v48, %s1716_s19 }
  0x63   : > { %1522 = vrot.lane.b32.xlu1 %v1481_v15, %s1709_s26 }
  0x66   : > { %1517 = vrot.lane.b32.xlu0 %v1476_v29, %s1709_s26 }
  0x67   : > { %1532 = vrot.lane.b32.xlu1 %v1929_v28, %s1710_s27 }
  0x6a   : > { %1527 = vrot.lane.b32.xlu0 %v1939_v62, %s1710_s27 }
  0x6b   : > { %1542 = vrot.lane.b32.xlu1 %v1511_v49, %s1710_s27 }
  0x6e   : > { %1537 = vrot.lane.b32.xlu0 %v1506_v48, %s1710_s27 }
  0x6f   : > { %1552 = vrot.lane.b32.xlu1 %v1984_v47, %s1711_s28 }
  0x72   : > { %1547 = vrot.lane.b32.xlu0 %v1456_v59, %s1711_s28 }
  0x73   : > { %1562 = vrot.lane.b32.xlu1 %v1561_v38, %s1711_s28 }
  0x76   : > { %1557 = vrot.lane.b32.xlu0 %v1556_v46, %s1711_s28  ;;  %s2404_s28 = scalar_lea.vmem %s2456_s3, %s1216_s25 }
  0x77   : > { %1572 = vrot.lane.b32.xlu1 %v1481_v15, %s1712_s29 }
  0x7a   : > { %1567 = vrot.lane.b32.xlu0 %v1476_v29, %s1712_s29 }
  0x7b   : > { %1582 = vrot.lane.b32.xlu1 %v1957_v25, %s1712_s29 }
  0x7e   : > { %1577 = vrot.lane.b32.xlu0 %v1840_v55, %s1712_s29 }
  0x7f   : > { %1592 = vrot.lane.b32.xlu1 %v1511_v49, %s1713_s30 }
  0x82   : > { %1587 = vrot.lane.b32.xlu0 %v1506_v48, %s1713_s30 }
  0x83   : > { %1602 = vrot.lane.b32.xlu1 %v1967_v33, %s1713_s30 }
  0x86   : > { %1597 = vrot.lane.b32.xlu0 %v1842_v56, %s1713_s30 }
  0x87   : > { %1612 = vrot.lane.b32.xlu1 %v1561_v38, %s1714_s4 }
  0x8a   : > { %1607 = vrot.lane.b32.xlu0 %v1556_v46, %s1714_s4 }
  0x8b   : > { %1622 = vrot.lane.b32.xlu1 %v1621_v53, %s1714_s4 }
  0x8e   : > { %1617 = vrot.lane.b32.xlu0 %v1865_v9, %s1714_s4 }
  0x8f   : > { %1632 = vrot.lane.b32.xlu1 %v1957_v25, %s1715_s7 }
  0x91   : > { %v1358_v54 = vpop.permute.xlu1 %1357 }
  0x92   : > { %1627 = vrot.lane.b32.xlu0 %v1840_v55, %s1715_s7  ;;  %v1348_v28 = vpop.permute.xlu0 %1347  ;;  %v1360_v59 = vunpack.i.h.bf16 %v1358_v54 }
  0x93   : > { %1642 = vrot.lane.b32.xlu1 %v1641_v58, %s1715_s7  ;;  %v1350_v61 = vunpack.i.h.bf16 %v1348_v28  ;;  %v1349_v2 = vunpack.i.l.bf16 %v1348_v28 }
  0x94   : > { %v794_v30 = vsel %vm790_vm3, %v1785_v4, %v1360_v59 }
  0x95   : > { %v1363_v62 = vpop.permute.xlu1 %1362  ;;  %v792_v37 = vsel %vm790_vm3, %v1793_v10, %v1350_v61  ;;  %v791_v40 = vsel %vm790_vm3, %v1788_v6, %v1349_v2 }
  0x96   : > { %1637 = vrot.lane.b32.xlu0 %v1828_v43, %s1715_s7  ;;  %v1365_v7 = vunpack.i.h.bf16 %v1363_v62  ;;  %v1364_v5 = vunpack.i.l.bf16 %v1363_v62 }
  0x97   : > { %1652 = vrot.lane.b32.xlu1 %v1967_v33, %s1716_s19 }
  0x98   : > { %v1353_v9 = vpop.permute.xlu0 %1352  ;;  %v802_v42 = vsel %vm790_vm3, %v1797_v13, %v1365_v7  ;;  %v801_v4 = vsel %vm790_vm3, %v1795_v12, %v1364_v5 }
  0x99   : > { %v1373_v23 = vpop.permute.xlu1 %1372  ;;  %v1355_v27 = vunpack.i.h.bf16 %v1353_v9  ;;  %v1354_v15 = vunpack.i.l.bf16 %v1353_v9 }
  0x9a   : > { %1647 = vrot.lane.b32.xlu0 %v1842_v56, %s1716_s19  ;;  %v1375_v18 = vunpack.i.h.bf16 %v1373_v23  ;;  %v1374_v22 = vunpack.i.l.bf16 %v1373_v23 }
  0x9b   : > { %1662 = vrot.lane.b32.xlu1 %v1661_v60, %s1716_s19  ;;  %v1359_v60 = vunpack.i.l.bf16 %v1358_v54  ;;  %v799_v10 = vsel %vm790_vm3, %v1808_v26, %v1354_v15 }
  0x9c   : > { %v1368_v55 = vpop.permute.xlu0 %1367  ;;  %v816_v49 = vsel %vm807_vm4, %v799_v10, %v1374_v22 }
  0x9d   : > { %v1388_v25 = vpop.permute.xlu1 %1387  ;;  %v1369_v24 = vunpack.i.l.bf16 %v1368_v55  ;;  %v793_v36 = vsel %vm790_vm3, %v1783_v3, %v1359_v60  ;;  %v1370_v8 = vunpack.i.h.bf16 %v1368_v55  ;;  %v800_v3 = vsel %vm790_vm3, %v1816_v34, %v1355_v27 }
  0x9e   : > { %1657 = vrot.lane.b32.xlu0 %v1852_v0, %s1716_s19  ;;  %v1390_v35 = vunpack.i.h.bf16 %v1388_v25  ;;  %v1389_v44 = vunpack.i.l.bf16 %v1388_v25  ;;  %v817_v6 = vsel %vm807_vm4, %v800_v3, %v1375_v18 }
  0x9f   : > { %v808_v50 = vsel %vm807_vm4, %v791_v40, %v1369_v24  ;;  %v809_v12 = vsel %vm807_vm4, %v792_v37, %v1370_v8 }
  0xa0   : > { %v2102_v31 = vpop.permute.xlu0 %1377  ;;  %v818_v46 = vsel %vm807_vm4, %v801_v4, %v1389_v44  ;;  %v819_v53 = vsel %vm807_vm4, %v802_v42, %v1390_v35 }
  0xa1   : > { %v2104_v43 = vpop.permute.xlu1 %1392  ;;  %v1380_v45 = vunpack.i.h.bf16 %v2102_v31  ;;  %v1379_v13 = vunpack.i.l.bf16 %v2102_v31 }
  0xa2   : > { %v1395_v34 = vunpack.i.h.bf16 %v2104_v43  ;;  %v1394_v48 = vunpack.i.l.bf16 %v2104_v43 }
  0xa3   : > { %v811_v62 = vsel %vm807_vm4, %v794_v30, %v1380_v45  ;;  %v810_v25 = vsel %vm807_vm4, %v793_v36, %v1379_v13 }
  0xa4   : > { %v2106_v33 = vpop.permute.xlu0 %1382  ;;  %v833_v60 = vsel %vm824_vm5, %v816_v49, %v1394_v48  ;;  %v834_v61 = vsel %vm824_vm5, %v817_v6, %v1395_v34 }
  0xa5   : > { %v2108_v41 = vpop.permute.xlu1 %1402  ;;  %v1384_v26 = vunpack.i.l.bf16 %v2106_v33  ;;  %v1385_v54 = vunpack.i.h.bf16 %v2106_v33 }
  0xa6   : > { %v1404_v28 = vunpack.i.l.bf16 %v2108_v41  ;;  %v1405_v9 = vunpack.i.h.bf16 %v2108_v41 }
  0xa7   : > { %v825_v41 = vsel %vm824_vm5, %v808_v50, %v1384_v26  ;;  %v826_v7 = vsel %vm824_vm5, %v809_v12, %v1385_v54 }
  0xa8   : > { %v2110_v47 = vpop.permute.xlu0 %1397  ;;  %v835_v5 = vsel %vm824_vm5, %v818_v46, %v1404_v28  ;;  %v836_v15 = vsel %vm824_vm5, %v819_v53, %v1405_v9 }
  0xa9   : > { %v2112_v56 = vpop.permute.xlu1 %1412  ;;  %v1400_v23 = vunpack.i.h.bf16 %v2110_v47  ;;  %v1399_v55 = vunpack.i.l.bf16 %v2110_v47 }
  0xaa   : > { %v1415_v31 = vunpack.i.h.bf16 %v2112_v56  ;;  %v1414_v43 = vunpack.i.l.bf16 %v2112_v56 }
  0xab   : > { %v2183_v18 = vsel %vm824_vm5, %v810_v25, %v1399_v55  ;;  %v2186_v22 = vsel %vm824_vm5, %v811_v62, %v1400_v23 }
  0xac   : > { %v2114_v52 = vpop.permute.xlu0 %1407  ;;  %v850_v24 = vsel %vm841_vm6, %v833_v60, %v1414_v43  ;;  %v851_v30 = vsel %vm841_vm6, %v834_v61, %v1415_v31 }
  0xad   : > { %v2116_v57 = vpop.permute.xlu1 %1422  ;;  %v1409_v59 = vunpack.i.l.bf16 %v2114_v52  ;;  %v1410_v2 = vunpack.i.h.bf16 %v2114_v52 }
  0xae   : > { %v1425_v56 = vunpack.i.h.bf16 %v2116_v57  ;;  %v1424_v27 = vunpack.i.l.bf16 %v2116_v57 }
  0xaf   : > { %v842_v36 = vsel %vm841_vm6, %v825_v41, %v1409_v59  ;;  %v843_v57 = vsel %vm841_vm6, %v826_v7, %v1410_v2 }
  0xb0   : > { %v2118_v58 = vpop.permute.xlu0 %1417  ;;  %v852_v4 = vsel %vm841_vm6, %v835_v5, %v1424_v27  ;;  %v853_v3 = vsel %vm841_vm6, %v836_v15, %v1425_v56 }
  0xb1   : > { %v2120_v21 = vpop.permute.xlu1 %1432  ;;  %v1420_v10 = vunpack.i.h.bf16 %v2118_v58 }
  0xb2   : > { %v1434_v52 = vunpack.i.l.bf16 %v2120_v21  ;;  %v1435_v37 = vunpack.i.h.bf16 %v2120_v21  ;;  %v1419_v21 = vunpack.i.l.bf16 %v2118_v58 }
  0xb4   : > { %v2122_v0 = vpop.permute.xlu0 %1427  ;;  %v867_v45 = vsel %vm858_vm7, %v850_v24, %v1434_v52  ;;  %v868_v13 = vsel %vm858_vm7, %v851_v30, %v1435_v37 }
  0xb5   : > { %v2124_v1 = vpop.permute.xlu1 %1442  ;;  %v1429_v40 = vunpack.i.l.bf16 %v2122_v0  ;;  %v1430_v49 = vunpack.i.h.bf16 %v2122_v0 }
  0xb6   : > { %v1444_v12 = vunpack.i.l.bf16 %v2124_v1 }
  0xb7   : > { %v859_v26 = vsel %vm858_vm7, %v842_v36, %v1429_v40  ;;  %v860_v23 = vsel %vm858_vm7, %v843_v57, %v1430_v49 }
  0xb8   : > { %v2126_v29 = vpop.permute.xlu0 %1437  ;;  %v869_v5 = vsel %vm858_vm7, %v852_v4, %v1444_v12 }
  0xb9   : > { %v2134_v39 = vpop.permute.xlu1 %1452  ;;  %v1439_v56 = vunpack.i.l.bf16 %v2126_v29  ;;  %v1440_v37 = vunpack.i.h.bf16 %v2126_v29 }
  0xba   : > { %v1455_v42 = vunpack.i.h.bf16 %v2134_v39  ;;  %v1454_v35 = vunpack.i.l.bf16 %v2134_v39  ;;  %v1445_v39 = vunpack.i.h.bf16 %v2124_v1 }
  0xbc   : > { %v2151_v51 = vpop.permute.xlu0 %1447  ;;  %v884_v58 = vsel %vm875_vm8, %v867_v45, %v1454_v35  ;;  %v885_v46 = vsel %vm875_vm8, %v868_v13, %v1455_v42  ;;  %v870_v36 = vsel %vm858_vm7, %v853_v3, %v1445_v39  ;;  %v844_v42 = vsel %vm841_vm6, %v2183_v18, %v1419_v21 }
  0xbd   : > { %v2157_v38 = vpop.permute.xlu1 %1462  ;;  %v1449_v34 = vunpack.i.l.bf16 %v2151_v51  ;;  %v1450_v0 = vunpack.i.h.bf16 %v2151_v51  ;;  %v861_v18 = vsel %vm858_vm7, %v844_v42, %v1439_v56 }
  0xbe   : > { %v1465_v1 = vunpack.i.h.bf16 %v2157_v38  ;;  %v1464_v43 = vunpack.i.l.bf16 %v2157_v38 }
  0xbf   : > { %v876_v31 = vsel %vm875_vm8, %v859_v26, %v1449_v34  ;;  %v877_v61 = vsel %vm875_vm8, %v860_v23, %v1450_v0 }
  0xc0   : > { %v2171_v33 = vpop.permute.xlu0 %1457  ;;  %v886_v35 = vsel %vm875_vm8, %v869_v5, %v1464_v43 }
  0xc1   : > { %v1473_v47 = vpop.permute.xlu1 %1472  ;;  %v1460_v4 = vunpack.i.h.bf16 %v2171_v33 }
  0xc2   : > { %v1475_v6 = vunpack.i.h.bf16 %v1473_v47  ;;  %v1474_v50 = vunpack.i.l.bf16 %v1473_v47 }
  0xc4   : > { %v1468_v8 = vpop.permute.xlu0 %1467  ;;  %v901_v55 = vsel %vm892_vm9, %v884_v58, %v1474_v50  ;;  %v902_v25 = vsel %vm892_vm9, %v885_v46, %v1475_v6  ;;  %v845_v50 = vsel %vm841_vm6, %v2186_v22, %v1420_v10 }
  0xc5   : > { %v2197_v44 = vpop.permute.xlu1 %1482  ;;  %v1470_v54 = vunpack.i.h.bf16 %v1468_v8  ;;  %v1469_v28 = vunpack.i.l.bf16 %v1468_v8  ;;  %v1459_v8 = vunpack.i.l.bf16 %v2171_v33  ;;  %v862_v33 = vsel %vm858_vm7, %v845_v50, %v1440_v37 }
  0xc6   : > { %v1485_v15 = vunpack.i.h.bf16 %v2197_v44  ;;  %v1484_v52 = vunpack.i.l.bf16 %v2197_v44  ;;  %v887_v44 = vsel %vm875_vm8, %v870_v36, %v1465_v1  ;;  %v879_v26 = vsel %vm875_vm8, %v862_v33, %v1460_v4 }
  0xc7   : > { %v893_v27 = vsel %vm892_vm9, %v876_v31, %v1469_v28  ;;  %v894_v38 = vsel %vm892_vm9, %v877_v61, %v1470_v54  ;;  %v878_v39 = vsel %vm875_vm8, %v861_v18, %v1459_v8 }
  0xc8   : > { %v2209_v48 = vpop.permute.xlu0 %1477  ;;  %v903_v21 = vsel %vm892_vm9, %v886_v35, %v1484_v52  ;;  %v904_v13 = vsel %vm892_vm9, %v887_v44, %v1485_v15 }
  0xc9   : > { %v1493_v53 = vpop.permute.xlu1 %1492  ;;  %v1480_v49 = vunpack.i.h.bf16 %v2209_v48  ;;  %v1479_v3 = vunpack.i.l.bf16 %v2209_v48 }
  0xca   : > { %v1495_v62 = vunpack.i.h.bf16 %v1493_v53  ;;  %v1494_v9 = vunpack.i.l.bf16 %v1493_v53 }
  0xcb   : > { %v895_v0 = vsel %vm892_vm9, %v878_v39, %v1479_v3  ;;  %v896_v53 = vsel %vm892_vm9, %v879_v26, %v1480_v49 }
  0xcc   : > { %v1488_v59 = vpop.permute.xlu0 %1487  ;;  %v918_v51 = vsel %vm909_vm10, %v901_v55, %v1494_v9  ;;  %v919_v60 = vsel %vm909_vm10, %v902_v25, %v1495_v62 }
  0xcd   : > { %v1490_v41 = vunpack.i.h.bf16 %v1488_v59  ;;  %v1489_v2 = vunpack.i.l.bf16 %v1488_v59  ;;  %v2224_v47 = vpop.permute.xlu1 %1502  ;;  %v930_v7 = vpack.c.bf16 %v919_v60, %v918_v51 }
  0xce   : > { %v1504_v5 = vunpack.i.l.bf16 %v2224_v47 }
  0xcf   : > { %v910_v24 = vsel %vm909_vm10, %v893_v27, %v1489_v2  ;;  %v911_v30 = vsel %vm909_vm10, %v894_v38, %v1490_v41  ;;  %1280 = vmatprep.mubr.msk.bf16.mxu1 %vm955_vm11, %v930_v7  ;;  %v1505_v2 = vunpack.i.h.bf16 %v2224_v47 }
  0xd0   : > { %v2238_v57 = vpop.permute.xlu0 %1497  ;;  %v926_v40 = vpack.c.bf16 %v911_v30, %v910_v24  ;;  %v803_v47 = vsel %vm790_vm3, %v1867_v11, %v1504_v5 }
  0xd1   : > { %v1513_v45 = vpop.permute.xlu1 %1512  ;;  %v1500_v27 = vunpack.i.h.bf16 %v2238_v57  ;;  %v1499_v38 = vunpack.i.l.bf16 %v2238_v57  ;;  %v804_v30 = vsel %vm790_vm3, %v1869_v14, %v1505_v2 }
  0xd2   : > { %1272 = vmatprep.mubr.msk.bf16.mxu0 %vm955_vm11, %v926_v40  ;;  %v1515_v29 = vunpack.i.h.bf16 %v1513_v45  ;;  %v1514_v6 = vunpack.i.l.bf16 %v1513_v45 }
  0xd3   : > { %v796_v57 = vsel %vm790_vm3, %v1879_v20, %v1500_v27  ;;  %v795_v45 = vsel %vm790_vm3, %v1877_v19, %v1499_v38 }
  0xd4   : > { %v920_v12 = vsel %vm909_vm10, %v903_v21, %v1514_v6  ;;  %v921_v34 = vsel %vm909_vm10, %v904_v13, %v1515_v29  ;;  %v1508_v48 = vpop.permute.xlu0 %1507 }
  0xd5   : > { %v931_v58 = vpack.c.bf16 %v921_v34, %v920_v12  ;;  %v1510_v46 = vunpack.i.h.bf16 %v1508_v48  ;;  %v1509_v22 = vunpack.i.l.bf16 %v1508_v48  ;;  %v1523_v10 = vpop.permute.xlu1 %1522 }
  0xd6   : > { %v1525_v15 = vunpack.i.h.bf16 %v1523_v10  ;;  %v1524_v52 = vunpack.i.l.bf16 %v1523_v10 }
  0xd7   : > { %v912_v54 = vsel %vm909_vm10, %v895_v0, %v1509_v22  ;;  %v913_v28 = vsel %vm909_vm10, %v896_v53, %v1510_v46  ;;  %1281 = vmatmul.mubr.msk.bf16.vlgmr.msra.gmra.mrb[0].mxu1 %vm955_vm11, %v931_v58 }
  0xd8   : > { %v927_v62 = vpack.c.bf16 %v913_v28, %v912_v54  ;;  %v1518_v9 = vpop.permute.xlu0 %1517  ;;  %v806_v14 = vsel %vm790_vm3, %v1946_v16, %v1525_v15  ;;  %v805_v3 = vsel %vm790_vm3, %v1941_v63, %v1524_v52 }
  0xd9   : > { %v1533_v23 = vpop.permute.xlu1 %1532  ;;  %v1520_v24 = vunpack.i.h.bf16 %v1518_v9  ;;  %v1519_v36 = vunpack.i.l.bf16 %v1518_v9 }
  0xda   : > { %1273 = vmatmul.mubr.msk.bf16.vlgmr.msra.gmra.mrb[0].mxu0 %vm955_vm11, %v927_v62  ;;  %v1535_v37 = vunpack.i.h.bf16 %v1533_v23  ;;  %v1534_v8 = vunpack.i.l.bf16 %v1533_v23 }
  0xdb   : > { %v798_v11 = vsel %vm790_vm3, %v1965_v32, %v1520_v24  ;;  %v797_v50 = vsel %vm790_vm3, %v1948_v17, %v1519_v36 }
  0xdc   : > { %v1528_v1 = vpop.permute.xlu0 %1527  ;;  %v820_v20 = vsel %vm807_vm4, %v803_v47, %v1534_v8  ;;  %v821_v18 = vsel %vm807_vm4, %v804_v30, %v1535_v37 }
  0xdd   : > { %v1543_v55 = vpop.permute.xlu1 %1542  ;;  %v1530_v42 = vunpack.i.h.bf16 %v1528_v1  ;;  %v1529_v35 = vunpack.i.l.bf16 %v1528_v1 }
  0xde   : > { %v1544_v44 = vunpack.i.l.bf16 %v1543_v55  ;;  %v1545_v49 = vunpack.i.h.bf16 %v1543_v55 }
  0xdf   : > { %v812_v16 = vsel %vm807_vm4, %v795_v45, %v1529_v35  ;;  %v813_v13 = vsel %vm807_vm4, %v796_v57, %v1530_v42 }
  0xe0   : > { %v1538_v25 = vpop.permute.xlu0 %1537  ;;  %v822_v63 = vsel %vm807_vm4, %v805_v3, %v1544_v44  ;;  %v823_v39 = vsel %vm807_vm4, %v806_v14, %v1545_v49 }
  0xe1   : > { %v1553_v31 = vpop.permute.xlu1 %1552  ;;  %v1540_v29 = vunpack.i.h.bf16 %v1538_v25  ;;  %v1539_v6 = vunpack.i.l.bf16 %v1538_v25 }
  0xe2   : > { %v1554_v19 = vunpack.i.l.bf16 %v1553_v31  ;;  %v1555_v33 = vunpack.i.h.bf16 %v1553_v31 }
  0xe3   : > { %v814_v48 = vsel %vm807_vm4, %v797_v50, %v1539_v6  ;;  %v815_v26 = vsel %vm807_vm4, %v798_v11, %v1540_v29 }
  0xe4   : > { %v2264_v43 = vpop.permute.xlu0 %1547  ;;  %v837_v22 = vsel %vm824_vm5, %v820_v20, %v1554_v19  ;;  %v838_v28 = vsel %vm824_vm5, %v821_v18, %v1555_v33 }
  0xe5   : > { %v2266_v59 = vpop.permute.xlu1 %1562  ;;  %v1550_v17 = vunpack.i.h.bf16 %v2264_v43  ;;  %v1549_v12 = vunpack.i.l.bf16 %v2264_v43 }
  0xe6   : > { %v1564_v34 = vunpack.i.l.bf16 %v2266_v59  ;;  %v1565_v58 = vunpack.i.h.bf16 %v2266_v59 }
  0xe7   : > { %v829_v55 = vsel %vm824_vm5, %v812_v16, %v1549_v12  ;;  %v830_v25 = vsel %vm824_vm5, %v813_v13, %v1550_v17 }
  0xe8   : > { %v2268_v51 = vpop.permute.xlu0 %1557  ;;  %v839_v31 = vsel %vm824_vm5, %v822_v63, %v1564_v34  ;;  %v840_v59 = vsel %vm824_vm5, %v823_v39, %v1565_v58 }
  0xe9   : > { %v2270_v60 = vpop.permute.xlu1 %1572  ;;  %v1559_v46 = vunpack.i.l.bf16 %v2268_v51  ;;  %v1560_v10 = vunpack.i.h.bf16 %v2268_v51 }
  0xea   : > { %v1575_v0 = vunpack.i.h.bf16 %v2270_v60  ;;  %v1574_v53 = vunpack.i.l.bf16 %v2270_v60 }
  0xeb   : > { %v831_v51 = vsel %vm824_vm5, %v814_v48, %v1559_v46 }
  0xec   : > { %v2272_v61 = vpop.permute.xlu0 %1567  ;;  %v854_v5 = vsel %vm841_vm6, %v837_v22, %v1574_v53  ;;  %v855_v27 = vsel %vm841_vm6, %v838_v28, %v1575_v0 }
  0xed   : > { %v2274_v41 = vpop.permute.xlu1 %1582  ;;  %v1570_v62 = vunpack.i.h.bf16 %v2272_v61  ;;  %v1569_v9 = vunpack.i.l.bf16 %v2272_v61  ;;  %v832_v61 = vsel %vm824_vm5, %v815_v26, %v1560_v10 }
  0xee   : > { %v1584_v23 = vunpack.i.l.bf16 %v2274_v41  ;;  %v1585_v43 = vunpack.i.h.bf16 %v2274_v41 }
  0xef   : > { %v846_v41 = vsel %vm841_vm6, %v829_v55, %v1569_v9  ;;  %v847_v52 = vsel %vm841_vm6, %v830_v25, %v1570_v62 }
  0xf0   : > { %v2277_v7 = vpop.permute.xlu0 %1577  ;;  %v856_v24 = vsel %vm841_vm6, %v839_v31, %v1584_v23 }
  0xf1   : > { %v2280_v56 = vpop.permute.xlu1 %1592  ;;  %v1580_v60 = vunpack.i.h.bf16 %v2277_v7  ;;  %v1579_v2 = vunpack.i.l.bf16 %v2277_v7  ;;  %v857_v7 = vsel %vm841_vm6, %v840_v59, %v1585_v43 }
  0xf2   : > { %v1594_v38 = vunpack.i.l.bf16 %v2280_v56  ;;  %v1595_v30 = vunpack.i.h.bf16 %v2280_v56 }
  0xf3   : > { %v848_v42 = vsel %vm841_vm6, %v831_v51, %v1579_v2  ;;  %v849_v35 = vsel %vm841_vm6, %v832_v61, %v1580_v60 }
  0xf4   : > { %v2286_v40 = vpop.permute.xlu0 %1587  ;;  %v871_v45 = vsel %vm858_vm7, %v854_v5, %v1594_v38 }
  0xf5   : > { %v2290_v4 = vpop.permute.xlu1 %1602  ;;  %v1590_v37 = vunpack.i.h.bf16 %v2286_v40  ;;  %v1589_v8 = vunpack.i.l.bf16 %v2286_v40  ;;  %v872_v40 = vsel %vm858_vm7, %v855_v27, %v1595_v30 }
  0xf6   : > { %v1604_v47 = vunpack.i.l.bf16 %v2290_v4  ;;  %v1605_v44 = vunpack.i.h.bf16 %v2290_v4 }
  0xf7   : > { %v863_v20 = vsel %vm858_vm7, %v846_v41, %v1589_v8  ;;  %v864_v4 = vsel %vm858_vm7, %v847_v52, %v1590_v37 }
  0xf8   : > { %v2306_v21 = vpop.permute.xlu0 %1597  ;;  %v873_v18 = vsel %vm858_vm7, %v856_v24, %v1604_v47 }
  0xf9   : > { %v2311_v32 = vpop.permute.xlu1 %1612  ;;  %v1599_v57 = vunpack.i.l.bf16 %v2306_v21  ;;  %v1600_v56 = vunpack.i.h.bf16 %v2306_v21  ;;  %v874_v21 = vsel %vm858_vm7, %v857_v7, %v1605_v44 }
  0xfa   : > { %v1615_v14 = vunpack.i.h.bf16 %v2311_v32  ;;  %v1614_v49 = vunpack.i.l.bf16 %v2311_v32 }
  0xfb   : > { %v865_v16 = vsel %vm858_vm7, %v848_v42, %v1599_v57  ;;  %v866_v33 = vsel %vm858_vm7, %v849_v35, %v1600_v56 }
  0xfc   : > { %v1608_v54 = vpop.permute.xlu0 %1607  ;;  %v888_v32 = vsel %vm875_vm8, %v871_v45, %v1614_v49  ;;  %v889_v39 = vsel %vm875_vm8, %v872_v40, %v1615_v14 }
  0xfd   : > { %v1623_v1 = vpop.permute.xlu1 %1622  ;;  %v1610_v11 = vunpack.i.h.bf16 %v1608_v54  ;;  %v1609_v29 = vunpack.i.l.bf16 %v1608_v54 }
  0xfe   : > { %v1624_v6 = vunpack.i.l.bf16 %v1623_v1  ;;  %v1625_v19 = vunpack.i.h.bf16 %v1623_v1 }
  0xff   : > { %v880_v34 = vsel %vm875_vm8, %v863_v20, %v1609_v29  ;;  %v881_v48 = vsel %vm875_vm8, %v864_v4, %v1610_v11 }
 0x100   : > { %v2341_v15 = vpop.permute.xlu0 %1617  ;;  %v890_v26 = vsel %vm875_vm8, %v873_v18, %v1624_v6  ;;  %v891_v22 = vsel %vm875_vm8, %v874_v21, %v1625_v19 }
 0x101   : > { %v1633_v36 = vpop.permute.xlu1 %1632  ;;  %v1620_v10 = vunpack.i.h.bf16 %v2341_v15  ;;  %v1619_v23 = vunpack.i.l.bf16 %v2341_v15 }
 0x102   : > { %v1635_v13 = vunpack.i.h.bf16 %v1633_v36  ;;  %v1634_v63 = vunpack.i.l.bf16 %v1633_v36 }
 0x103   : > { %v882_v30 = vsel %vm875_vm8, %v865_v16, %v1619_v23  ;;  %v883_v47 = vsel %vm875_vm8, %v866_v33, %v1620_v10 }
 0x104   : > { %v1628_v3 = vpop.permute.xlu0 %1627  ;;  %v905_v54 = vsel %vm892_vm9, %v888_v32, %v1634_v63  ;;  %v906_v28 = vsel %vm892_vm9, %v889_v39, %v1635_v13 }
 0x105   : > { %v1643_v50 = vpop.permute.xlu1 %1642  ;;  %v1629_v17 = vunpack.i.l.bf16 %v1628_v3  ;;  %v1630_v58 = vunpack.i.h.bf16 %v1628_v3  ;;  %v1217_v3 = vld [vmem:[%s2455_s2] ss:$0 sm:$0xff] }
 0x106   : > { %v1645_v62 = vunpack.i.h.bf16 %v1643_v50  ;;  %v1644_v9 = vunpack.i.l.bf16 %v1643_v50 }
 0x107   : > { %v897_v1 = vsel %vm892_vm9, %v880_v34, %v1629_v17  ;;  %v898_v43 = vsel %vm892_vm9, %v881_v48, %v1630_v58 }
 0x108   : > { %v1638_v12 = vpop.permute.xlu0 %1637  ;;  %v907_v41 = vsel %vm892_vm9, %v890_v26, %v1644_v9  ;;  %v908_v15 = vsel %vm892_vm9, %v891_v22, %v1645_v62 }
 0x109   : > { %v1653_v46 = vpop.permute.xlu1 %1652  ;;  %v1640_v61 = vunpack.i.h.bf16 %v1638_v12  ;;  %v1639_v5 = vunpack.i.l.bf16 %v1638_v12 }
 0x10a   : > { %v1655_v0 = vunpack.i.h.bf16 %v1653_v46  ;;  %v1654_v53 = vunpack.i.l.bf16 %v1653_v46 }
 0x10b   : > { %v899_v57 = vsel %vm892_vm9, %v882_v30, %v1639_v5  ;;  %v900_v45 = vsel %vm892_vm9, %v883_v47, %v1640_v61 }
 0x10c   : > { %v922_v55 = vsel %vm909_vm10, %v905_v54, %v1654_v53  ;;  %v923_v25 = vsel %vm909_vm10, %v906_v28, %v1655_v0  ;;  %v1648_v31 = vpop.permute.xlu0 %1647 }
 0x10d   : > { %v932_v59 = vpack.c.bf16 %v923_v25, %v922_v55  ;;  %v1650_v51 = vunpack.i.h.bf16 %v1648_v31  ;;  %v1649_v60 = vunpack.i.l.bf16 %v1648_v31  ;;  %v1663_v2 = vpop.permute.xlu1 %1662 }
 0x10e   : > { %v1665_v27 = vunpack.i.h.bf16 %v1663_v2  ;;  %v1664_v38 = vunpack.i.l.bf16 %v1663_v2 }
 0x10f   : > { %v914_v52 = vsel %vm909_vm10, %v897_v1, %v1649_v60  ;;  %v915_v24 = vsel %vm909_vm10, %v898_v43, %v1650_v51  ;;  %1284 = vmatprep.mubr.msk.bf16.mxu1 %vm955_vm11, %v932_v59 }
 0x110   : > { %v928_v36 = vpack.c.bf16 %v915_v24, %v914_v52  ;;  %v924_v7 = vsel %vm909_vm10, %v907_v41, %v1664_v38  ;;  %v925_v37 = vsel %vm909_vm10, %v908_v15, %v1665_v27  ;;  %v1658_v8 = vpop.permute.xlu0 %1657 }
 0x111   : > { %v933_v42 = vpack.c.bf16 %v925_v37, %v924_v7  ;;  %v1660_v35 = vunpack.i.h.bf16 %v1658_v8  ;;  %v1659_v44 = vunpack.i.l.bf16 %v1658_v8 }
 0x112   : > { %1276 = vmatprep.mubr.msk.bf16.mxu0 %vm955_vm11, %v928_v36 }
 0x113   : > { %v916_v56 = vsel %vm909_vm10, %v899_v57, %v1659_v44  ;;  %v917_v14 = vsel %vm909_vm10, %v900_v45, %v1660_v35  ;;  %1285 = vmatmul.mubr.msk.bf16.gmra.mrb[4].mxu1 %vm955_vm11, %v933_v42 }
 0x114   : > { %v929_v49 = vpack.c.bf16 %v917_v14, %v916_v56 }
 0x116   : > { %1277 = vmatmul.mubr.msk.bf16.gmra.mrb[4].mxu0 %vm955_vm11, %v929_v49 }
 0x1aa   : > { %v1282_v40 = vpop.f32.mrb[0].mxu1 }
 0x1ab   : > { %v1059_v11 = vadd.f32 %v1282_v40, %v1217_v3  ;;  %v1050_v29 = vpop.f32.mrb[1].mxu1 }
 0x1ac   : > { %v1051_v6 = vadd.f32 %v1217_v3, %v1050_v29  ;;  %v1283_v50 = vpop.f32.mrb[2].mxu1 }
 0x1ad   : > { %v1274_v20 = vpop.f32.mrb[0].mxu0  ;;  %v1091_v4 = vmax.f32 %v1059_v11, 0.0  ;;  %v1062_v18 = vadd.f32 %v1283_v50, %v1217_v3  ;;  %v1053_v19 = vpop.f32.mrb[3].mxu1 }
 0x1ae   : > { %v1027_v21 = vadd.f32 %v1274_v20, %v1217_v3  ;;  %v1018_v16 = vpop.f32.mrb[1].mxu0  ;;  %v1089_v13 = vmax.f32 %v1051_v6, 0.0  ;;  %v1054_v63 = vadd.f32 %v1217_v3, %v1053_v19 }
 0x1af   : > { %1107 = vst.msk [vmem:[%s2404_s28 + $0x50] sm:$0xff] %vm790_vm3, %v1091_v4  ;;  %v1019_v33 = vadd.f32 %v1217_v3, %v1018_v16  ;;  %v1275_v32 = vpop.f32.mrb[2].mxu0  ;;  %v1092_v39 = vmax.f32 %v1062_v18, 0.0 }
 0x1b0   : > { %v1083_v17 = vmax.f32 %v1027_v21, 0.0  ;;  %1105 = vst.msk [vmem:[%s2404_s28 + $0x40] sm:$0xff] %vm790_vm3, %v1089_v13  ;;  %v1030_v12 = vadd.f32 %v1275_v32, %v1217_v3  ;;  %v1021_v34 = vpop.f32.mrb[3].mxu0  ;;  %v1090_v48 = vmax.f32 %v1054_v63, 0.0 }
 0x1b1   : > { %v1081_v26 = vmax.f32 %v1019_v33, 0.0  ;;  %1108 = vst.msk [vmem:[%s2404_s28 + $0x58] sm:$0xff] %vm790_vm3, %v1092_v39  ;;  %v1022_v58 = vadd.f32 %v1217_v3, %v1021_v34 }
 0x1b2   : > { %1099 = vst.msk [vmem:[%s2404_s28 + $0x10] sm:$0xff] %vm790_vm3, %v1083_v17  ;;  %v1084_v46 = vmax.f32 %v1030_v12, 0.0  ;;  %1106 = vst.msk [vmem:[%s2404_s28 + $0x48] sm:$0xff] %vm790_vm3, %v1090_v48 }
 0x1b3   : > { %1097 = vst.msk [vmem:[%s2404_s28] sm:$0xff] %vm790_vm3, %v1081_v26  ;;  %v1082_v22 = vmax.f32 %v1022_v58, 0.0 }
 0x1b4   : > { %1100 = vst.msk [vmem:[%s2404_s28 + $0x18] sm:$0xff] %vm790_vm3, %v1084_v46 }
 0x1b5   : > { %1098 = vst.msk [vmem:[%s2404_s28 + $0x8] sm:$0xff] %vm790_vm3, %v1082_v22 }
 0x1e6   : > { %v1286_v10 = vpop.f32.mrb[4].mxu1 }
 0x1e7   : > { %v1075_v0 = vadd.f32 %v1286_v10, %v1217_v3  ;;  %v1066_v53 = vpop.f32.mrb[5].mxu1 }
 0x1e8   : > { %v1067_v54 = vadd.f32 %v1217_v3, %v1066_v53  ;;  %v1287_v28 = vpop.f32.mrb[6].mxu1 }
 0x1e9   : > { %v1278_v62 = vpop.f32.mrb[4].mxu0  ;;  %v1095_v9 = vmax.f32 %v1075_v0, 0.0  ;;  %v1078_v23 = vadd.f32 %v1287_v28, %v1217_v3  ;;  %v1069_v1 = vpop.f32.mrb[7].mxu1 }
 0x1ea   : > { %v1043_v55 = vadd.f32 %v1278_v62, %v1217_v3  ;;  %v1034_v25 = vpop.f32.mrb[5].mxu0  ;;  %v1093_v31 = vmax.f32 %v1067_v54, 0.0  ;;  %v1070_v43 = vadd.f32 %v1217_v3, %v1069_v1 }
 0x1eb   : > { %1111 = vst.msk [vmem:[%s2404_s28 + $0x70] sm:$0xff] %vm790_vm3, %v1095_v9  ;;  %v1035_v59 = vadd.f32 %v1217_v3, %v1034_v25  ;;  %v1279_v51 = vpop.f32.mrb[6].mxu0  ;;  %v1096_v60 = vmax.f32 %v1078_v23, 0.0 }
 0x1ec   : > { %v1087_v2 = vmax.f32 %v1043_v55, 0.0  ;;  %1109 = vst.msk [vmem:[%s2404_s28 + $0x60] sm:$0xff] %vm790_vm3, %v1093_v31  ;;  %v1046_v61 = vadd.f32 %v1279_v51, %v1217_v3  ;;  %v1037_v5 = vpop.f32.mrb[7].mxu0  ;;  %v1094_v27 = vmax.f32 %v1070_v43, 0.0 }
 0x1ed   : > { %v1085_v38 = vmax.f32 %v1035_v59, 0.0  ;;  %1112 = vst.msk [vmem:[%s2404_s28 + $0x78] sm:$0xff] %vm790_vm3, %v1096_v60  ;;  %v1038_v41 = vadd.f32 %v1217_v3, %v1037_v5 }
 0x1ee   : > { %1103 = vst.msk [vmem:[%s2404_s28 + $0x30] sm:$0xff] %vm790_vm3, %v1087_v2  ;;  %v1088_v15 = vmax.f32 %v1046_v61, 0.0  ;;  %1110 = vst.msk [vmem:[%s2404_s28 + $0x68] sm:$0xff] %vm790_vm3, %v1094_v27 }
 0x1ef   : > { %1101 = vst.msk [vmem:[%s2404_s28 + $0x20] sm:$0xff] %vm790_vm3, %v1085_v38  ;;  %v1086_v52 = vmax.f32 %v1038_v41, 0.0 }
 0x1f0   : > { %1104 = vst.msk [vmem:[%s2404_s28 + $0x38] sm:$0xff] %vm790_vm3, %v1088_v15 }
 0x1f1   : > { %1102 = vst.msk [vmem:[%s2404_s28 + $0x28] sm:$0xff] %vm790_vm3, %v1086_v52 }
 0x1f2 PF: > { %s13_s16 = sadd.s32 1, %s1707_s16   ;;  %s2457_s12 = smov %s1699_s14 }
 0x1f3   : > { %p10_p7 = scmp.ge.s32.totalorder %s13_s16, 6   ;;  %s2458_s13 = smov %s1703_s15 }
 0x1f4   : > { %s2459_s14 = smov %s2462_s17  ;;  %s2460_s15 = smov %s2466_s18 }
 0x1f5   :  { %12 = sbr.rel (!%p10_p7) target bundleno = 3 (0x3), region = 62 }

// kernel: residual_cnn_block.5
= control target key start
LH: loop header
LB: loop body
LE: loop exit
PB: predicated region body
PF: predicated region fallthrough
CT: control target
= control target key end

     0   :  { %s618_s15 = smov 0   ;;  %s620_s16 = smov 0   ;;  %s784_s0 = inlined_call_operand.vmem [shape: f32[2,2,128,4], index: 0, kind: input, shape index: {}]   ;;  %s785_s1 = inlined_call_operand.vmem [shape: f32[2,2,128,4], index: 1, kind: input, shape index: {}]   ;;  %s786_s2 = inlined_call_operand.vmem [shape: f32[1,4], index: 2, kind: input, shape index: {}]   ;;  %s787_s3 = inlined_call_operand.vmem [shape: f32[1,4], index: 3, kind: input, shape index: {}]   ;;  %s788_s4 = inlined_call_operand.vmem [shape: f32[2,2,128,4], index: 4, kind: output, shape index: {}]  }
   0x1   :  { %s622_s17 = smov 0   ;;  %s624_s18 = smov 0  }
   0x2   :  { %s626_s19 = smov 0  }
   0x3 LB: > { %s23_s20 = sadd.s32 1, %s583_s17  ;;  %s26_s21 = sadd.s32 1, %s587_s18  ;;  %s591_s19 = sphi %s626_s19, %s14_s19   ;;  %s587_s18 = sphi %s624_s18, %s792_s18   ;;  %s583_s17 = sphi %s622_s17, %s791_s17   ;;  %s579_s16 = sphi %s620_s16, %s790_s16   ;;  %s575_s15 = sphi %s618_s15, %s789_s15  }
   0x4   : > { %p24_p0 = scmp.ge.s32.totalorder %s23_s20, 2  ;;  %p499_p1 = scmp.ge.s32.totalorder %s591_s19, 1 }
   0x5   : > { %p198_p2 = scmp.lt.s32.totalorder %s591_s19, 5 }
   0x6   : > { %s794_s20 = smov (%p24_p0, %s23_s20), 0  ;;  %s796_s21 = smov (!%p24_p0, %s26_s21), %s587_s18 }
   0x7   : > { %p199_p3 = pnand %p499_p1, %p198_p2  ;;  %p28_p4 = scmp.ge.s32.totalorder %s796_s21, 2 }
   0x8   : > { %p241_p5 = scmp.lt.s32.totalorder (!%p199_p3), %s579_s16, 1  ;;  %p243_p6 = scmp.lt.s32.totalorder (!%p199_p3), %s575_s15, 1  ;;  %v651_v0 = vld [vmem:[%s786_s2] ss:$0 sm:$0xff] (!%p199_p3)  ;;  %vm362_vm0 = vcmask (!%p199_p3), 31744  }
   0x9   : > { %s798_s21 = smov (%p28_p4, %s796_s21), 0  ;;  %202 = sbr.rel (%p199_p3) target bundleno = 41 (0x29), region = 36 }
   0xa   : > { %v667_v2 = vld [vmem:[%s787_s3] ss:$0 sm:$0xff] (!%p199_p3) }
  0x10   : > { %s800_s16 = smov (!%p241_p5, %s579_s16), 1  ;;  %s802_s15 = smov (!%p243_p6, %s575_s15), 1 }
  0x11   : > { %s501_s22 = sshll.u32 %s800_s16, 5  ;;  %s500_s23 = sshll.u32 %s802_s15, 4 }
  0x12   : > { %s247_s24 = sadd.s32 %s501_s22, %s500_s23 }
  0x13   : > { %s502_s25 = sshll.u32 %s247_s24, 3 }
  0x14   : > { %s656_s30 = scalar_lea.vmem %s784_s0, %s502_s25  ;;  %s661_s7 = scalar_lea.vmem %s785_s1, %s502_s25 }
  0x15   : > { %v268_v1 = vld [vmem:[%s656_s30] sm:$0xff]  ;;  %v269_v3 = vld [vmem:[%s656_s30 + $0x8] sm:$0xff]  ;;  %v270_v7 = vld [vmem:[%s656_s30 + $0x10] sm:$0xff]  ;;  %s688_s12 = scalar_lea.vmem %s788_s4, %s502_s25 }
  0x16   : > { %v291_v4 = vmul.f32 %v651_v0, %v268_v1  ;;  %v330_v5 = vld [vmem:[%s661_s7] sm:$0xff]  ;;  %v292_v6 = vmul.f32 %v651_v0, %v269_v3  ;;  %v331_v8 = vld [vmem:[%s661_s7 + $0x8] sm:$0xff]  ;;  %v293_v9 = vmul.f32 %v651_v0, %v270_v7  ;;  %v271_v10 = vld [vmem:[%s656_s30 + $0x18] sm:$0xff] }
  0x17   : > { %v272_v11 = vld [vmem:[%s656_s30 + $0x20] sm:$0xff]  ;;  %v332_v14 = vld [vmem:[%s661_s7 + $0x10] sm:$0xff]  ;;  %v294_v15 = vmul.f32 %v651_v0, %v271_v10  ;;  %v333_v16 = vld [vmem:[%s661_s7 + $0x18] sm:$0xff] }
  0x18   : > { %v314_v12 = vadd.f32 %v667_v2, %v291_v4  ;;  %v315_v13 = vadd.f32 %v667_v2, %v292_v6  ;;  %v295_v17 = vmul.f32 %v651_v0, %v272_v11  ;;  %v273_v18 = vld [vmem:[%s656_s30 + $0x28] sm:$0xff]  ;;  %v316_v19 = vadd.f32 %v667_v2, %v293_v9  ;;  %v334_v20 = vld [vmem:[%s661_s7 + $0x20] sm:$0xff]  ;;  %v274_v22 = vld [vmem:[%s656_s30 + $0x30] sm:$0xff] }
  0x19   : > { %v296_v21 = vmul.f32 %v651_v0, %v273_v18  ;;  %v275_v23 = vld [vmem:[%s656_s30 + $0x38] sm:$0xff]  ;;  %v317_v26 = vadd.f32 %v667_v2, %v294_v15  ;;  %v335_v28 = vld [vmem:[%s661_s7 + $0x28] sm:$0xff]  ;;  %v276_v29 = vld [vmem:[%s656_s30 + $0x40] sm:$0xff]  ;;  %v297_v32 = vmul.f32 %v651_v0, %v274_v22 }
  0x1a   : > { %v346_v24 = vadd.f32 %v330_v5, %v314_v12  ;;  %v347_v25 = vadd.f32 %v331_v8, %v315_v13  ;;  %v318_v27 = vadd.f32 %v667_v2, %v295_v17  ;;  %v348_v30 = vadd.f32 %v332_v14, %v316_v19  ;;  %v336_v33 = vld [vmem:[%s661_s7 + $0x30] sm:$0xff]  ;;  %v277_v35 = vld [vmem:[%s656_s30 + $0x48] sm:$0xff]  ;;  %v337_v39 = vld [vmem:[%s661_s7 + $0x38] sm:$0xff] }
  0x1b   : > { %v319_v31 = vadd.f32 %v667_v2, %v296_v21  ;;  %v298_v34 = vmul.f32 %v651_v0, %v275_v23  ;;  %v278_v36 = vld [vmem:[%s656_s30 + $0x50] sm:$0xff]  ;;  %v349_v37 = vadd.f32 %v333_v16, %v317_v26  ;;  %v299_v40 = vmul.f32 %v651_v0, %v276_v29  ;;  %v338_v41 = vld [vmem:[%s661_s7 + $0x40] sm:$0xff]  ;;  %v279_v43 = vld [vmem:[%s656_s30 + $0x58] sm:$0xff] }
  0x1c   : > { %363 = vst.msk [vmem:[%s688_s12] sm:$0xff] %vm362_vm0, %v346_v24  ;;  %364 = vst.msk [vmem:[%s688_s12 + $0x8] sm:$0xff] %vm362_vm0, %v347_v25  ;;  %v350_v38 = vadd.f32 %v334_v20, %v318_v27  ;;  %v300_v42 = vmul.f32 %v651_v0, %v277_v35  ;;  %v320_v45 = vadd.f32 %v667_v2, %v297_v32  ;;  %v339_v47 = vld [vmem:[%s661_s7 + $0x48] sm:$0xff]  ;;  %v280_v49 = vld [vmem:[%s656_s30 + $0x60] sm:$0xff] }
  0x1d   : > { %365 = vst.msk [vmem:[%s688_s12 + $0x10] sm:$0xff] %vm362_vm0, %v348_v30  ;;  %v351_v44 = vadd.f32 %v335_v28, %v319_v31  ;;  %v321_v46 = vadd.f32 %v667_v2, %v298_v34  ;;  %v301_v48 = vmul.f32 %v651_v0, %v278_v36  ;;  %v281_v50 = vld [vmem:[%s656_s30 + $0x68] sm:$0xff]  ;;  %366 = vst.msk [vmem:[%s688_s12 + $0x18] sm:$0xff] %vm362_vm0, %v349_v37  ;;  %v340_v53 = vld [vmem:[%s661_s7 + $0x50] sm:$0xff] }
  0x1e   : > { %367 = vst.msk [vmem:[%s688_s12 + $0x20] sm:$0xff] %vm362_vm0, %v350_v38  ;;  %v322_v51 = vadd.f32 %v667_v2, %v299_v40  ;;  %v323_v52 = vadd.f32 %v667_v2, %v300_v42  ;;  %v302_v54 = vmul.f32 %v651_v0, %v279_v43  ;;  %v303_v55 = vmul.f32 %v651_v0, %v280_v49  ;;  %v282_v56 = vld [vmem:[%s656_s30 + $0x70] sm:$0xff]  ;;  %v341_v60 = vld [vmem:[%s661_s7 + $0x58] sm:$0xff]  ;;  %v342_v61 = vld [vmem:[%s661_s7 + $0x60] sm:$0xff] }
  0x1f   : > { %368 = vst.msk [vmem:[%s688_s12 + $0x28] sm:$0xff] %vm362_vm0, %v351_v44  ;;  %v352_v57 = vadd.f32 %v336_v33, %v320_v45  ;;  %v353_v58 = vadd.f32 %v337_v39, %v321_v46  ;;  %v324_v59 = vadd.f32 %v667_v2, %v301_v48  ;;  %v304_v62 = vmul.f32 %v651_v0, %v281_v50  ;;  %v283_v63 = vld [vmem:[%s656_s30 + $0x78] sm:$0xff]  ;;  %v343_v6 = vld [vmem:[%s661_s7 + $0x68] sm:$0xff]  ;;  %v344_v13 = vld [vmem:[%s661_s7 + $0x70] sm:$0xff] }
  0x20   : > { %v354_v1 = vadd.f32 %v338_v41, %v322_v51  ;;  %v355_v3 = vadd.f32 %v339_v47, %v323_v52  ;;  %v325_v4 = vadd.f32 %v667_v2, %v302_v54  ;;  %v326_v5 = vadd.f32 %v667_v2, %v303_v55  ;;  %v345_v14 = vld [vmem:[%s661_s7 + $0x78] sm:$0xff] }
  0x21   : > { %369 = vst.msk [vmem:[%s688_s12 + $0x30] sm:$0xff] %vm362_vm0, %v352_v57  ;;  %370 = vst.msk [vmem:[%s688_s12 + $0x38] sm:$0xff] %vm362_vm0, %v353_v58  ;;  %v356_v7 = vadd.f32 %v340_v53, %v324_v59  ;;  %v327_v8 = vadd.f32 %v667_v2, %v304_v62  ;;  %v305_v9 = vmul.f32 %v651_v0, %v282_v56 }
  0x22   : > { %v306_v10 = vmul.f32 %v651_v0, %v283_v63  ;;  %371 = vst.msk [vmem:[%s688_s12 + $0x40] sm:$0xff] %vm362_vm0, %v354_v1  ;;  %372 = vst.msk [vmem:[%s688_s12 + $0x48] sm:$0xff] %vm362_vm0, %v355_v3  ;;  %v357_v11 = vadd.f32 %v341_v60, %v325_v4  ;;  %v358_v12 = vadd.f32 %v342_v61, %v326_v5 }
  0x23   : > { %373 = vst.msk [vmem:[%s688_s12 + $0x50] sm:$0xff] %vm362_vm0, %v356_v7  ;;  %v359_v15 = vadd.f32 %v343_v6, %v327_v8  ;;  %v328_v16 = vadd.f32 %v667_v2, %v305_v9 }
  0x24   : > { %v329_v17 = vadd.f32 %v667_v2, %v306_v10  ;;  %374 = vst.msk [vmem:[%s688_s12 + $0x58] sm:$0xff] %vm362_vm0, %v357_v11  ;;  %375 = vst.msk [vmem:[%s688_s12 + $0x60] sm:$0xff] %vm362_vm0, %v358_v12 }
  0x25   : > { %376 = vst.msk [vmem:[%s688_s12 + $0x68] sm:$0xff] %vm362_vm0, %v359_v15  ;;  %v360_v0 = vadd.f32 %v344_v13, %v328_v16 }
  0x26   : > { %v361_v18 = vadd.f32 %v345_v14, %v329_v17 }
  0x27   : > { %377 = vst.msk [vmem:[%s688_s12 + $0x70] sm:$0xff] %vm362_vm0, %v360_v0 }
  0x28   : > { %378 = vst.msk [vmem:[%s688_s12 + $0x78] sm:$0xff] %vm362_vm0, %v361_v18 }
  0x29 PF: > { %s14_s19 = sadd.s32 1, %s591_s19   ;;  %s789_s15 = smov %s583_s17 }
  0x2a   : > { %p11_p7 = scmp.ge.s32.totalorder %s14_s19, 6   ;;  %s790_s16 = smov %s587_s18 }
  0x2b   : > { %s791_s17 = smov %s794_s20  ;;  %s792_s18 = smov %s798_s21 }
  0x2c   :  { %13 = sbr.rel (!%p11_p7) target bundleno = 3 (0x3), region = 69 }

// kernel: residual_cnn_block.4
= control target key start
LH: loop header
LB: loop body
LE: loop exit
PB: predicated region body
PF: predicated region fallthrough
CT: control target
= control target key end

     0   :  { %s1880_s15 = smov 0   ;;  %s1882_s16 = smov 0   ;;  %s2550_s0 = inlined_call_operand.vmem [shape: bf16[2,2,10,18,4], index: 0, kind: input, shape index: {}]   ;;  %s2551_s1 = inlined_call_operand.vmem [shape: bf16[36,4], index: 1, kind: input, shape index: {}]   ;;  %s2552_s2 = inlined_call_operand.vmem [shape: f32[1,4], index: 2, kind: input, shape index: {}]   ;;  %s2553_s3 = inlined_call_operand.vmem [shape: f32[2,2,128,4], index: 3, kind: output, shape index: {0}]   ;;  %s2554_s4 = inlined_call_operand.vmem [shape: f32[2,4], index: 4, kind: output, shape index: {1}]  }
   0x1   :  { %s1884_s17 = smov 0   ;;  %s1886_s18 = smov 0  }
   0x2   :  { %s1888_s19 = smov 0  }
   0x3 LB: > { %s24_s20 = sadd.s32 1, %s1837_s17  ;;  %s27_s21 = sadd.s32 1, %s1841_s18  ;;  %s1845_s19 = sphi %s1888_s19, %s15_s19   ;;  %s1841_s18 = sphi %s1886_s18, %s2559_s18   ;;  %s1837_s17 = sphi %s1884_s17, %s2558_s17   ;;  %s1833_s16 = sphi %s1882_s16, %s2557_s16   ;;  %s1829_s15 = sphi %s1880_s15, %s2556_s15  }
   0x4   : > { %p25_p0 = scmp.ge.s32.totalorder %s24_s20, 2  ;;  %p1350_p1 = scmp.ge.s32.totalorder %s1845_s19, 1 }
   0x5   : > { %p180_p2 = scmp.lt.s32.totalorder %s1845_s19, 5 }
   0x6   : > { %s2561_s20 = smov (%p25_p0, %s24_s20), 0  ;;  %s2563_s21 = smov (!%p25_p0, %s27_s21), %s1841_s18 }
   0x7   : > { %p181_p3 = pnand %p1350_p1, %p180_p2  ;;  %p29_p4 = scmp.ge.s32.totalorder %s2563_s21, 2 }
   0x8   : > { %p214_p5 = scmp.lt.s32.totalorder (!%p181_p3), %s1833_s16, 1  ;;  %p216_p6 = scmp.lt.s32.totalorder (!%p181_p3), %s1829_s15, 1  ;;  %vm364_vm0 = vcmask (!%p181_p3), 1045504   ;;  %vm323_vm1 = vcmask (!%p181_p3), 1046528   ;;  %v1804_v57 = vld [vmem:[%s2551_s1] sm:$0xff] (!%p181_p3)   ;;  %vm1005_vm2 = vcmask (!%p181_p3), 1041408  }
   0x9   : > { %s2565_s21 = smov (%p29_p4, %s2563_s21), 0  ;;  %184 = sbr.rel (%p181_p3) target bundleno = 527 (0x20f), region = 32 }
   0xa   : > { %s1847_s5 = smov (!%p181_p3), 12   ;;  %s1848_s6 = smov (!%p181_p3), 8   ;;  %1404 = vmatprep.subr.bf16.mxu0 (!%p181_p3), %v1804_v57  ;;  %1426 = vmatprep.subr.bf16.mxu1 (!%p181_p3), %v1804_v57  ;;  %vm815_vm3 = vcmask (!%p181_p3), 31744   ;;  %vm832_vm4 = vcmask (!%p181_p3), 64512   ;;  %vm849_vm5 = vcmask (!%p181_p3), 97280   ;;  %vm866_vm6 = vcmask (!%p181_p3), 130048  }
   0xb   : > { %s1849_s7 = smov (!%p181_p3), 4   ;;  %s1850_s10 = smov (!%p181_p3), 16   ;;  %1405 = vmatpush3.bf16.msra.mxu0 (!%p181_p3), %v1804_v57  ;;  %1429 = vmatpush3.bf16.msra.mxu1 (!%p181_p3), %v1804_v57  ;;  %vm883_vm7 = vcmask (!%p181_p3), 162816   ;;  %vm900_vm8 = vcmask (!%p181_p3), 195584   ;;  %vm917_vm9 = vcmask (!%p181_p3), 228352   ;;  %vm934_vm10 = vcmask (!%p181_p3), 261120  }
   0xc   : > { %s1851_s13 = smov (!%p181_p3), 20   ;;  %s1852_s14 = smov (!%p181_p3), 24   ;;  %vm980_vm11 = vcmask (!%p181_p3), 293888   ;;  %vm1228_vm12 = vcmask (!%p181_p3), 1040384  }
   0xd   : > { %p1230_p7 = scmp.eq.s32.totalorder (!%p181_p3), %s1833_s16, 0  ;;  %p1231_p8 = scmp.eq.s32.totalorder (!%p181_p3), %s1829_s15, 0 }
   0xf   : > { %p2428_p9 = pnand (!%p181_p3), %p1231_p8, %p1230_p7 }
  0x10   : > { %s1917_s22 = scalar_select %p214_p5, %s1833_s16, 1 }
  0x11   : > { %s1920_s23 = scalar_select %p216_p6, %s1829_s15, 1 }
  0x12   : > { %s1435_s24 = smul.u32 60, %s1917_s22  ;;  %s1353_s29 = sshll.u32 %s1917_s22, 5  ;;  %vm1236_vm13 = vcmask (!%p2428_p9), 25600  }
  0x13   : > { %s1434_s25 = smul.u32 30, %s1920_s23  ;;  %s1352_s28 = sshll.u32 %s1920_s23, 4 }
  0x15   : > { %s220_s26 = sadd.s32 %s1435_s24, %s1434_s25  ;;  %s1853_s24 = smov 28  }
  0x16   : > { %s1351_s27 = sshll.u32 %s220_s26, 2  ;;  %s1854_s25 = smov 32  }
  0x17   : > { %s1927_s30 = scalar_lea.vmem %s2550_s0, %s1351_s27 }
  0x18   : > { %v1389_v0 = vld [vmem:[%s1927_s30 + $0x18] sm:$0xff]   ;;  %v236_v1 = vld [vmem:[%s1927_s30 + $0xc] sm:$0xff]   ;;  %v1370_v2 = vld [vmem:[%s1927_s30] sm:$0xff]  }
  0x19   : > { %v1932_v3 = vunpack.c.l.bf16 %v1389_v0  ;;  %v1934_v4 = vunpack.c.h.bf16 %v1389_v0  ;;  %v1936_v5 = vunpack.c.l.bf16 %v236_v1  ;;  %v1938_v6 = vunpack.c.h.bf16 %v236_v1  ;;  %v235_v7 = vld [vmem:[%s1927_s30 + $0x8] sm:$0x1]  ;;  %v238_v8 = vld [vmem:[%s1927_s30 + $0x14] sm:$0x1]  ;;  %v241_v29 = vld [vmem:[%s1927_s30 + $0x20] sm:$0x1] }
  0x1a   : > { %v1942_v9 = vunpack.c.l.bf16 %v1370_v2  ;;  %v1944_v10 = vunpack.c.h.bf16 %v1370_v2  ;;  %v271_v11 = vunpack.c.l.bf16 %v235_v7  ;;  %v274_v12 = vunpack.c.l.bf16 %v238_v8  ;;  %v242_v44 = vld [vmem:[%s1927_s30 + $0x24] sm:$0xff]   ;;  %v244_v48 = vld [vmem:[%s1927_s30 + $0x2c] sm:$0x1]  ;;  %v1390_v62 = vld [vmem:[%s1927_s30 + $0x30] sm:$0xff]  }
  0x1b   : > { %v1948_v13 = vpack.i.bf16 %v1934_v4, %v1932_v3  ;;  %v1484_v14 = vpack.i.bf16 %v1938_v6, %v1936_v5  ;;  %v370_v15 = vrot.slane %v1936_v5, 2  ;;  %v371_v16 = vrot.slane %v1938_v6, 2  ;;  %v1805_v2 = vld [vmem:[%s2551_s1 + $0x8] sm:$0xff]  }
  0x1c   : > { %v365_v17 = vrot.slane %v1942_v9, 2  ;;  %v366_v18 = vrot.slane %v1944_v10, 2  ;;  %v368_v19 = vrot.slane %v271_v11, 2  ;;  %v324_v20 = vrot.slane %v1942_v9, 1  ;;  %1406 = vmatprep.subr.bf16.mxu0 %v1805_v2  ;;  %1427 = vmatprep.subr.bf16.mxu1 %v1805_v2 }
  0x1d   : > { %1490 = vrot.lane.b32.xlu1 %v1948_v13, %s1847_s5  ;;  %1485 = vrot.lane.b32.xlu0 %v1484_v14, %s1847_s5  ;;  %v325_v21 = vrot.slane %v1944_v10, 1  ;;  %v327_v22 = vrot.slane %v271_v11, 1  ;;  %v372_v23 = vsel %vm364_vm0, %v370_v15, %v371_v16  ;;  %v373_v24 = vrot.slane %v274_v12, 2 }
  0x1e   : > { %v367_v25 = vsel %vm364_vm0, %v365_v17, %v366_v18  ;;  %v369_v26 = vsel %vm364_vm0, %v366_v18, %v368_v19  ;;  %v329_v27 = vrot.slane %v1936_v5, 1  ;;  %v330_v28 = vrot.slane %v1938_v6, 1  ;;  %v247_v17 = vld [vmem:[%s1927_s30 + $0x38] sm:$0x1]  ;;  %1407 = vmatpush3.bf16.msra.mxu0 %v1805_v2  ;;  %v1391_v19 = vld [vmem:[%s1927_s30 + $0x48] sm:$0xff]   ;;  %1430 = vmatpush3.bf16.msra.mxu1 %v1805_v2 }
  0x1f   : > { %v1504_v30 = vpack.i.bf16 %v369_v26, %v367_v25  ;;  %v326_v31 = vsel %vm323_vm1, %v324_v20, %v325_v21  ;;  %v328_v32 = vsel %vm323_vm1, %v325_v21, %v327_v22  ;;  %v374_v33 = vsel %vm364_vm0, %v371_v16, %v373_v24  ;;  %v253_v22 = vld [vmem:[%s1927_s30 + $0x50] sm:$0x1]  ;;  %v248_v25 = vld [vmem:[%s1927_s30 + $0x3c] sm:$0xff]  }
  0x20   : > { %v1494_v34 = vpack.i.bf16 %v328_v32, %v326_v31  ;;  %v1509_v35 = vpack.i.bf16 %v374_v33, %v372_v23  ;;  %v331_v36 = vsel %vm323_vm1, %v329_v27, %v330_v28  ;;  %v332_v37 = vrot.slane %v274_v12, 1 }
  0x21   : > { %1505 = vrot.lane.b32.xlu1 %v1504_v30, %s1848_s6  ;;  %v277_v38 = vunpack.c.l.bf16 %v241_v29  ;;  %v334_v39 = vrot.slane %v1932_v3, 1  ;;  %v335_v40 = vrot.slane %v1934_v4, 1  ;;  %v375_v41 = vrot.slane %v1932_v3, 2  ;;  %v254_v30 = vld [vmem:[%s1927_s30 + $0x54] sm:$0xff]  }
  0x22   : > { %1495 = vrot.lane.b32.xlu0 %v1494_v34, %s1849_s7  ;;  %v333_v42 = vsel %vm323_vm1, %v330_v28, %v332_v37  ;;  %v376_v43 = vrot.slane %v1934_v4, 2  ;;  %v1984_v52 = vunpack.c.l.bf16 %v242_v44  ;;  %v1990_v55 = vunpack.c.h.bf16 %v242_v44 }
  0x23   : > { %v1499_v45 = vpack.i.bf16 %v333_v42, %v331_v36  ;;  %v336_v46 = vsel %vm323_vm1, %v334_v39, %v335_v40  ;;  %v337_v47 = vrot.slane %v277_v38, 1  ;;  %v378_v49 = vrot.slane %v277_v38, 2  ;;  %v256_v39 = vld [vmem:[%s1927_s30 + $0x5c] sm:$0x1] }
  0x24   : > { %v377_v51 = vsel %vm364_vm0, %v375_v41, %v376_v43  ;;  %v280_v56 = vunpack.c.l.bf16 %v244_v48  ;;  %v339_v59 = vrot.slane %v1984_v52, 1  ;;  %v340_v60 = vrot.slane %v1990_v55, 1 }
  0x25   : > { %1510 = vrot.lane.b32.xlu1 %v1509_v35, %s1848_s6  ;;  %v338_v50 = vsel %vm323_vm1, %v335_v40, %v337_v47  ;;  %v379_v54 = vsel %vm364_vm0, %v376_v43, %v378_v49  ;;  %v380_v63 = vrot.slane %v1984_v52, 2  ;;  %v381_v0 = vrot.slane %v1990_v55, 2 }
  0x26   : > { %1500 = vrot.lane.b32.xlu0 %v1499_v45, %s1849_s7  ;;  %v1987_v53 = vpack.i.bf16 %v338_v50, %v336_v46  ;;  %v1997_v58 = vpack.i.bf16 %v379_v54, %v377_v51  ;;  %v342_v61 = vrot.slane %v280_v56, 1  ;;  %v383_v1 = vrot.slane %v280_v56, 2 }
  0x27   : > { %v2012_v7 = vpack.i.bf16 %v1990_v55, %v1984_v52  ;;  %v341_v8 = vsel %vm323_vm1, %v339_v59, %v340_v60  ;;  %v2017_v12 = vunpack.c.l.bf16 %v1390_v62  ;;  %v2019_v14 = vunpack.c.h.bf16 %v1390_v62  ;;  %v1392_v59 = vld [vmem:[%s1927_s30 + $0x60] sm:$0xff]  }
  0x28   : > { %v343_v11 = vsel %vm323_vm1, %v340_v60, %v342_v61  ;;  %v382_v15 = vsel %vm364_vm0, %v380_v63, %v381_v0  ;;  %v384_v16 = vsel %vm364_vm0, %v381_v0, %v383_v1  ;;  %v283_v24 = vunpack.c.l.bf16 %v247_v17  ;;  %v2087_v61 = vld [vmem:[%s1927_s30 + $0x44] sm:$0x1] }
  0x29   : > { %1520 = vrot.lane.b32.xlu1 %v1987_v53, %s1850_s10  ;;  %v2026_v18 = vpack.i.bf16 %v343_v11, %v341_v8  ;;  %v344_v20 = vrot.slane %v2017_v12, 1  ;;  %v345_v21 = vrot.slane %v2019_v14, 1  ;;  %v2034_v23 = vpack.i.bf16 %v384_v16, %v382_v15  ;;  %v259_v15 = vld [vmem:[%s1927_s30 + $0x68] sm:$0x1] }
  0x2a   : > { %1515 = vrot.lane.b32.xlu0 %v1499_v45, %s1850_s10  ;;  %v2039_v26 = vpack.i.bf16 %v2019_v14, %v2017_v12  ;;  %v2041_v27 = vunpack.c.l.bf16 %v1391_v19  ;;  %v2043_v28 = vunpack.c.h.bf16 %v1391_v19  ;;  %v289_v29 = vunpack.c.l.bf16 %v253_v22 }
  0x2b   : > { %v2052_v31 = vsel %vm323_vm1, %v344_v20, %v345_v21  ;;  %v386_v32 = vrot.slane %v2019_v14, 2  ;;  %v2055_v33 = vunpack.c.l.bf16 %v248_v25  ;;  %v388_v40 = vrot.slane %v283_v24, 2  ;;  %v260_v20 = vld [vmem:[%s1927_s30 + $0x6c] sm:$0xff]  }
  0x2c   : > { %v354_v34 = vrot.slane %v2041_v27, 1  ;;  %v355_v36 = vrot.slane %v2043_v28, 1  ;;  %v357_v37 = vrot.slane %v289_v29, 1  ;;  %v395_v38 = vrot.slane %v2041_v27, 2 }
  0x2d   : > { %1530 = vrot.lane.b32.xlu1 %v1997_v58, %s1851_s13  ;;  %v396_v41 = vrot.slane %v2043_v28, 2  ;;  %v398_v42 = vrot.slane %v289_v29, 2  ;;  %v2062_v43 = vunpack.c.l.bf16 %v254_v30  ;;  %v2066_v44 = vunpack.c.h.bf16 %v248_v25 }
  0x2e   : > { %1525 = vrot.lane.b32.xlu0 %v1509_v35, %s1851_s13  ;;  %v347_v35 = vrot.slane %v283_v24, 1  ;;  %v356_v45 = vsel %vm323_vm1, %v354_v34, %v355_v36  ;;  %v358_v46 = vsel %vm323_vm1, %v355_v36, %v357_v37  ;;  %v2070_v47 = vunpack.c.h.bf16 %v254_v30  ;;  %v262_v34 = vld [vmem:[%s1927_s30 + $0x74] sm:$0x1] }
  0x2f   : > { %v2074_v48 = vpack.i.bf16 %v358_v46, %v356_v45  ;;  %v397_v49 = vsel %vm364_vm0, %v395_v38, %v396_v41  ;;  %v399_v50 = vsel %vm364_vm0, %v396_v41, %v398_v42  ;;  %v292_v51 = vunpack.c.l.bf16 %v256_v39 }
  0x30   : > { %v2079_v54 = vpack.i.bf16 %v399_v50, %v397_v49  ;;  %v359_v56 = vrot.slane %v2062_v43, 1  ;;  %v360_v57 = vrot.slane %v2070_v47, 1  ;;  %v400_v63 = vrot.slane %v2062_v43, 2 }
  0x31   : > { %1540 = vrot.lane.b32.xlu1 %v2012_v7, %s1852_s14  ;;  %v362_v60 = vrot.slane %v292_v51, 1  ;;  %v401_v0 = vrot.slane %v2070_v47, 2  ;;  %v403_v1 = vrot.slane %v292_v51, 2  ;;  %v2095_v8 = vunpack.c.l.bf16 %v1392_v59 }
  0x32   : > { %1535 = vrot.lane.b32.xlu0 %v1948_v13, %s1852_s14  ;;  %v385_v13 = vrot.slane %v2017_v12, 2  ;;  %v361_v62 = vsel %vm323_vm1, %v359_v56, %v360_v57  ;;  %v2097_v11 = vunpack.c.h.bf16 %v1392_v59  ;;  %v348_v22 = vsel %vm323_vm1, %v345_v21, %v347_v35 }
  0x33   : > { %v363_v2 = vsel %vm323_vm1, %v360_v57, %v362_v60  ;;  %v402_v17 = vsel %vm364_vm0, %v400_v63, %v401_v0  ;;  %v404_v19 = vsel %vm364_vm0, %v401_v0, %v403_v1  ;;  %v286_v24 = vunpack.c.l.bf16 %v2087_v61 }
  0x34   : > { %v2100_v16 = vpack.i.bf16 %v363_v2, %v361_v62  ;;  %v2107_v25 = vpack.i.bf16 %v404_v19, %v402_v17  ;;  %v408_v29 = vrot.slane %v2095_v8, 1  ;;  %v409_v30 = vrot.slane %v2097_v11, 1  ;;  %v1806_v62 = vld [vmem:[%s2551_s1 + $0x10] ss:$0 sps:$4 sm:$0x33]  }
  0x35   : > { %1550 = vrot.lane.b32.xlu1 %v2026_v18, %s1853_s24  ;;  %v413_v36 = vrot.slane %v2095_v8, 2  ;;  %v414_v21 = vrot.slane %v2097_v11, 2  ;;  %v2118_v35 = vunpack.c.l.bf16 %v260_v20  ;;  %v2121_v41 = vunpack.c.h.bf16 %v260_v20  ;;  %1432 = vmatprep.subr.msk.bf16.mxu0 %vm1005_vm2, %v1806_v62 }
  0x36   : > { %1545 = vrot.lane.b32.xlu0 %v1987_v53, %s1853_s24  ;;  %v410_v37 = vsel %vm323_vm1, %v408_v29, %v409_v30  ;;  %v389_v42 = vsel %vm364_vm0, %v386_v32, %v388_v40  ;;  %v298_v46 = vunpack.c.l.bf16 %v262_v34  ;;  %v349_v63 = vrot.slane %v2055_v33, 1  ;;  %1433 = vmatprep.subr.msk.bf16.mxu1 %vm1005_vm2, %v1806_v62 }
  0x37   : > { %v415_v45 = vsel %vm364_vm0, %v413_v36, %v414_v21  ;;  %v421_v49 = vrot.slane %v2118_v35, 1  ;;  %v422_v56 = vrot.slane %v2121_v41, 1  ;;  %v426_v60 = vrot.slane %v2118_v35, 2 }
  0x38   : > { %v424_v57 = vrot.slane %v298_v46, 1  ;;  %v429_v61 = vrot.slane %v298_v46, 2  ;;  %v350_v17 = vrot.slane %v2066_v44, 1  ;;  %v352_v19 = vrot.slane %v286_v24, 1 }
  0x39   : > { %1560 = vrot.lane.b32.xlu1 %v1987_v53, %s1849_s7  ;;  %v387_v53 = vsel %vm364_vm0, %v385_v13, %v386_v32  ;;  %v295_v13 = vunpack.c.l.bf16 %v259_v15  ;;  %v2139_v59 = vsel %vm323_vm1, %v421_v49, %v422_v56  ;;  %v391_v34 = vrot.slane %v2066_v44, 2 }
  0x3a   : > { %1555 = vrot.lane.b32.xlu0 %v1997_v58, %s1854_s25  ;;  %v1609_v0 = vpack.i.bf16 %v389_v42, %v387_v53  ;;  %v1007_v53 = vsel %vm1005_vm2, %v1806_v62, 0  ;;  %v393_v36 = vrot.slane %v286_v24, 2  ;;  %v1699_v24 = vpack.i.bf16 %v2070_v47, %v2062_v43 }
  0x3b   : > { %v411_v38 = vrot.slane %v295_v13, 1  ;;  %v416_v39 = vrot.slane %v295_v13, 2  ;;  %1409 = vmatpush3.bf16.msra.mxu0 %v1007_v53  ;;  %1431 = vmatpush3.bf16.msra.mxu1 %v1007_v53  ;;  %v353_v13 = vsel %vm323_vm1, %v350_v17, %v352_v19 }
  0x3d   : > { %1570 = vrot.lane.b32.xlu1 %v2026_v18, %s1849_s7  ;;  %v412_v50 = vsel %vm323_vm1, %v409_v30, %v411_v38  ;;  %v417_v51 = vsel %vm364_vm0, %v414_v21, %v416_v39  ;;  %v390_v30 = vrot.slane %v2055_v33, 2  ;;  %v394_v21 = vsel %vm364_vm0, %v391_v34, %v393_v36 }
  0x3e   : > { %1565 = vrot.lane.b32.xlu0 %v2034_v23, %s1854_s25  ;;  %v2134_v32 = vpack.i.bf16 %v412_v50, %v410_v37  ;;  %v2136_v40 = vpack.i.bf16 %v417_v51, %v415_v45  ;;  %v1749_v38 = vpack.i.bf16 %v2097_v11, %v2095_v8 }
  0x41   : > { %1580 = vrot.lane.b32.xlu1 %v2034_v23, %s1848_s6 }
  0x42   : > { %1575 = vrot.lane.b32.xlu0 %v1997_v58, %s1848_s6  ;;  %v1599_v58 = vpack.i.bf16 %v348_v22, %v2052_v31  ;;  %v427_v31 = vrot.slane %v2121_v41, 2  ;;  %v1619_v22 = vpack.i.bf16 %v2066_v44, %v2055_v33 }
  0x44   : > { %v2154_v2 = vsel %vm364_vm0, %v426_v60, %v427_v31  ;;  %v2157_v15 = vsel %vm364_vm0, %v427_v31, %v429_v61 }
  0x45   : > { %1590 = vrot.lane.b32.xlu1 %v2039_v26, %s1847_s5  ;;  %v1799_v20 = vpack.i.bf16 %v2157_v15, %v2154_v2 }
  0x46   : > { %1585 = vrot.lane.b32.xlu0 %v2012_v7, %s1847_s5  ;;  %v2148_v7 = vsel %vm323_vm1, %v422_v56, %v424_v57 }
  0x47   : > { %v1789_v1 = vpack.i.bf16 %v2148_v7, %v2139_v59 }
  0x49   : > { %1600 = vrot.lane.b32.xlu1 %v1599_v58, %s1850_s10 }
  0x4a   : > { %1595 = vrot.lane.b32.xlu0 %v2026_v18, %s1850_s10  ;;  %v351_v18 = vsel %vm323_vm1, %v349_v63, %v350_v17 }
  0x4b   : > { %v1629_v29 = vpack.i.bf16 %v353_v13, %v351_v18 }
  0x4d   : > { %1610 = vrot.lane.b32.xlu1 %v1609_v0, %s1851_s13 }
  0x4e   : > { %1605 = vrot.lane.b32.xlu0 %v2034_v23, %s1851_s13  ;;  %v392_v23 = vsel %vm364_vm0, %v390_v30, %v391_v34 }
  0x4f   : > { %v1644_v37 = vpack.i.bf16 %v394_v21, %v392_v23 }
  0x51   : > { %1620 = vrot.lane.b32.xlu1 %v1619_v22, %s1852_s14 }
  0x52   : > { %1615 = vrot.lane.b32.xlu0 %v2039_v26, %s1852_s14  ;;  %v1669_v26 = vpack.i.bf16 %v2043_v28, %v2041_v27 }
  0x55   : > { %1630 = vrot.lane.b32.xlu1 %v1629_v29, %s1853_s24 }
  0x56   : > { %1625 = vrot.lane.b32.xlu0 %v1599_v58, %s1853_s24 }
  0x59   : > { %1640 = vrot.lane.b32.xlu1 %v1599_v58, %s1849_s7 }
  0x5a   : > { %1635 = vrot.lane.b32.xlu0 %v1609_v0, %s1854_s25 }
  0x5d   : > { %1650 = vrot.lane.b32.xlu1 %v1629_v29, %s1849_s7 }
  0x5e   : > { %1645 = vrot.lane.b32.xlu0 %v1644_v37, %s1854_s25 }
  0x61   : > { %1660 = vrot.lane.b32.xlu1 %v1644_v37, %s1848_s6 }
  0x62   : > { %1655 = vrot.lane.b32.xlu0 %v1609_v0, %s1848_s6 }
  0x65   : > { %1670 = vrot.lane.b32.xlu1 %v1669_v26, %s1847_s5 }
  0x66   : > { %1665 = vrot.lane.b32.xlu0 %v1619_v22, %s1847_s5 }
  0x69   : > { %1680 = vrot.lane.b32.xlu1 %v2074_v48, %s1850_s10 }
  0x6a   : > { %1675 = vrot.lane.b32.xlu0 %v1629_v29, %s1850_s10 }
  0x6d   : > { %1690 = vrot.lane.b32.xlu1 %v2079_v54, %s1851_s13 }
  0x6e   : > { %1685 = vrot.lane.b32.xlu0 %v1644_v37, %s1851_s13 }
  0x71   : > { %1700 = vrot.lane.b32.xlu1 %v1699_v24, %s1852_s14 }
  0x72   : > { %1695 = vrot.lane.b32.xlu0 %v1669_v26, %s1852_s14 }
  0x75   : > { %1710 = vrot.lane.b32.xlu1 %v2100_v16, %s1853_s24 }
  0x76   : > { %1705 = vrot.lane.b32.xlu0 %v2074_v48, %s1853_s24 }
  0x79   : > { %1720 = vrot.lane.b32.xlu1 %v2074_v48, %s1849_s7  ;;  %v1779_v48 = vpack.i.bf16 %v2121_v41, %v2118_v35 }
  0x7a   : > { %1715 = vrot.lane.b32.xlu0 %v2079_v54, %s1854_s25 }
  0x7d   : > { %1730 = vrot.lane.b32.xlu1 %v2100_v16, %s1849_s7 }
  0x7e   : > { %1725 = vrot.lane.b32.xlu0 %v2107_v25, %s1854_s25 }
  0x81   : > { %1740 = vrot.lane.b32.xlu1 %v2107_v25, %s1848_s6 }
  0x82   : > { %1735 = vrot.lane.b32.xlu0 %v2079_v54, %s1848_s6 }
  0x85   : > { %1750 = vrot.lane.b32.xlu1 %v1749_v38, %s1847_s5 }
  0x86   : > { %1745 = vrot.lane.b32.xlu0 %v1699_v24, %s1847_s5  ;;  %s229_s5 = sadd.s32 %s1353_s29, %s1352_s28 }
  0x87   : > { %s1354_s8 = sshll.u32 %s229_s5, 3 }
  0x88   : > { %s2441_s15 = scalar_lea.vmem %s2553_s3, %s1354_s8 }
  0x89   : > { %1760 = vrot.lane.b32.xlu1 %v2134_v32, %s1850_s10 }
  0x8a   : > { %1755 = vrot.lane.b32.xlu0 %v2100_v16, %s1850_s10 }
  0x8d   : > { %1770 = vrot.lane.b32.xlu1 %v2136_v40, %s1851_s13 }
  0x8e   : > { %1765 = vrot.lane.b32.xlu0 %v2107_v25, %s1851_s13 }
  0x8f   : > { %v1491_v54 = vpop.permute.xlu1 %1490  ;;  %v1486_v8 = vpop.permute.xlu0 %1485 }
  0x90   : > { %v1492_v7 = vunpack.i.l.bf16 %v1491_v54  ;;  %v1488_v0 = vunpack.i.h.bf16 %v1486_v8 }
  0x91   : > { %1780 = vrot.lane.b32.xlu1 %v1779_v48, %s1852_s14 }
  0x92   : > { %1775 = vrot.lane.b32.xlu0 %v1749_v38, %s1852_s14 }
  0x93   : > { %v1506_v11 = vpop.permute.xlu1 %1505 }
  0x94   : > { %v1496_v39 = vpop.permute.xlu0 %1495  ;;  %v1508_v51 = vunpack.i.h.bf16 %v1506_v11  ;;  %v1507_v56 = vunpack.i.l.bf16 %v1506_v11 }
  0x95   : > { %1790 = vrot.lane.b32.xlu1 %v1789_v1, %s1853_s24  ;;  %v1498_v42 = vunpack.i.h.bf16 %v1496_v39  ;;  %v1497_v45 = vunpack.i.l.bf16 %v1496_v39  ;;  %v1487_v1 = vunpack.i.l.bf16 %v1486_v8 }
  0x96   : > { %1785 = vrot.lane.b32.xlu0 %v2134_v32, %s1853_s24 }
  0x97   : > { %v1511_v16 = vpop.permute.xlu1 %1510  ;;  %v817_v32 = vsel %vm815_vm3, %v1944_v10, %v1498_v42 }
  0x98   : > { %v1501_v35 = vpop.permute.xlu0 %1500  ;;  %v1513_v57 = vunpack.i.h.bf16 %v1511_v16  ;;  %v1512_v59 = vunpack.i.l.bf16 %v1511_v16  ;;  %v834_v10 = vsel %vm832_vm4, %v817_v32, %v1508_v51 }
  0x99   : > { %1800 = vrot.lane.b32.xlu1 %v1799_v20, %s1854_s25  ;;  %v1503_v49 = vunpack.i.h.bf16 %v1501_v35  ;;  %v1502_v58 = vunpack.i.l.bf16 %v1501_v35  ;;  %v851_v20 = vsel %vm849_vm5, %v834_v10, %v1488_v0 }
  0x9a   : > { %1795 = vrot.lane.b32.xlu0 %v2136_v40, %s1854_s25  ;;  %v816_v40 = vsel %vm815_vm3, %v1942_v9, %v1497_v45  ;;  %v1493_v9 = vunpack.i.h.bf16 %v1491_v54 }
  0x9b   : > { %v2244_v25 = vpop.permute.xlu1 %1520  ;;  %v819_v31 = vsel %vm815_vm3, %v1938_v6, %v1503_v49  ;;  %v818_v61 = vsel %vm815_vm3, %v1936_v5, %v1502_v58  ;;  %v833_v63 = vsel %vm832_vm4, %v816_v40, %v1507_v56 }
  0x9c   : > { %v1516_v41 = vpop.permute.xlu0 %1515  ;;  %v836_v2 = vsel %vm832_vm4, %v819_v31, %v1513_v57  ;;  %v835_v6 = vsel %vm832_vm4, %v818_v61, %v1512_v59  ;;  %v850_v19 = vsel %vm849_vm5, %v833_v63, %v1487_v1  ;;  %v1523_v13 = vunpack.i.h.bf16 %v2244_v25 }
  0x9d   : > { %v1518_v15 = vunpack.i.h.bf16 %v1516_v41  ;;  %v1517_v17 = vunpack.i.l.bf16 %v1516_v41  ;;  %v1522_v29 = vunpack.i.l.bf16 %v2244_v25  ;;  %v852_v36 = vsel %vm849_vm5, %v835_v6, %v1492_v7 }
  0x9e   : > { %v853_v23 = vsel %vm849_vm5, %v836_v2, %v1493_v9 }
  0x9f   : > { %v2246_v46 = vpop.permute.xlu1 %1530  ;;  %v867_v26 = vsel %vm866_vm6, %v850_v19, %v1517_v17  ;;  %v868_v24 = vsel %vm866_vm6, %v851_v20, %v1518_v15  ;;  %v869_v51 = vsel %vm866_vm6, %v852_v36, %v1522_v29  ;;  %v870_v56 = vsel %vm866_vm6, %v853_v23, %v1523_v13 }
  0xa0   : > { %v1526_v50 = vpop.permute.xlu0 %1525  ;;  %v1533_v38 = vunpack.i.h.bf16 %v2246_v46  ;;  %v1532_v48 = vunpack.i.l.bf16 %v2246_v46 }
  0xa1   : > { %v1528_v53 = vunpack.i.h.bf16 %v1526_v50  ;;  %v1527_v22 = vunpack.i.l.bf16 %v1526_v50 }
  0xa2   : > { %v886_v59 = vsel %vm883_vm7, %v869_v51, %v1532_v48 }
  0xa3   : > { %v2252_v60 = vpop.permute.xlu1 %1540  ;;  %v884_v8 = vsel %vm883_vm7, %v867_v26, %v1527_v22  ;;  %v885_v11 = vsel %vm883_vm7, %v868_v24, %v1528_v53 }
  0xa4   : > { %v1536_v62 = vpop.permute.xlu0 %1535  ;;  %v1543_v39 = vunpack.i.h.bf16 %v2252_v60  ;;  %v1542_v16 = vunpack.i.l.bf16 %v2252_v60  ;;  %v887_v60 = vsel %vm883_vm7, %v870_v56, %v1533_v38 }
  0xa5   : > { %v1538_v30 = vunpack.i.h.bf16 %v1536_v62  ;;  %v1537_v34 = vunpack.i.l.bf16 %v1536_v62 }
  0xa6   : > { %v903_v62 = vsel %vm900_vm8, %v886_v59, %v1542_v16  ;;  %v904_v10 = vsel %vm900_vm8, %v887_v60, %v1543_v39 }
  0xa7   : > { %v1551_v5 = vpop.permute.xlu1 %1550  ;;  %v901_v25 = vsel %vm900_vm8, %v884_v8, %v1537_v34  ;;  %v902_v41 = vsel %vm900_vm8, %v885_v11, %v1538_v30 }
  0xa8   : > { %v1546_v18 = vpop.permute.xlu0 %1545  ;;  %v1553_v49 = vunpack.i.h.bf16 %v1551_v5  ;;  %v1552_v58 = vunpack.i.l.bf16 %v1551_v5 }
  0xa9   : > { %v1548_v21 = vunpack.i.h.bf16 %v1546_v18  ;;  %v1547_v37 = vunpack.i.l.bf16 %v1546_v18 }
  0xaa   : > { %v920_v7 = vsel %vm917_vm9, %v903_v62, %v1552_v58  ;;  %v921_v0 = vsel %vm917_vm9, %v904_v10, %v1553_v49 }
  0xab   : > { %v1561_v54 = vpop.permute.xlu1 %1560  ;;  %v918_v46 = vsel %vm917_vm9, %v901_v25, %v1547_v37  ;;  %v919_v50 = vsel %vm917_vm9, %v902_v41, %v1548_v21 }
  0xac   : > { %v1556_v35 = vpop.permute.xlu0 %1555  ;;  %v1563_v30 = vunpack.i.h.bf16 %v1561_v54  ;;  %v1562_v34 = vunpack.i.l.bf16 %v1561_v54 }
  0xad   : > { %v1558_v42 = vunpack.i.h.bf16 %v1556_v35  ;;  %v1557_v45 = vunpack.i.l.bf16 %v1556_v35 }
  0xae   : > { %v821_v35 = vsel %vm815_vm3, %v1934_v4, %v1563_v30  ;;  %v820_v54 = vsel %vm815_vm3, %v1932_v3, %v1562_v34 }
  0xaf   : > { %v1571_v32 = vpop.permute.xlu1 %1570  ;;  %v935_v40 = vsel %vm934_vm10, %v918_v46, %v1557_v45  ;;  %v936_v57 = vsel %vm934_vm10, %v919_v50, %v1558_v42 }
  0xb0   : > { %v1566_v31 = vpop.permute.xlu0 %1565  ;;  %v951_v61 = vpack.c.bf16 %v936_v57, %v935_v40  ;;  %v1573_v13 = vunpack.i.h.bf16 %v1571_v32  ;;  %v1572_v29 = vunpack.i.l.bf16 %v1571_v32 }
  0xb1   : > { %v1568_v63 = vunpack.i.h.bf16 %v1566_v31  ;;  %v1567_v9 = vunpack.i.l.bf16 %v1566_v31 }
  0xb2   : > { %1410 = vmatprep.mubr.msk.bf16.mxu0 %vm980_vm11, %v951_v61  ;;  %v823_v8 = vsel %vm815_vm3, %v1990_v55, %v1573_v13  ;;  %v822_v11 = vsel %vm815_vm3, %v1984_v52, %v1572_v29 }
  0xb3   : > { %v937_v1 = vsel %vm934_vm10, %v920_v7, %v1567_v9  ;;  %v938_v2 = vsel %vm934_vm10, %v921_v0, %v1568_v63  ;;  %v1581_v6 = vpop.permute.xlu1 %1580 }
  0xb4   : > { %v952_v15 = vpack.c.bf16 %v938_v2, %v937_v1  ;;  %v1576_v17 = vpop.permute.xlu0 %1575  ;;  %v1583_v36 = vunpack.i.h.bf16 %v1581_v6  ;;  %v1582_v23 = vunpack.i.l.bf16 %v1581_v6 }
  0xb5   : > { %v1578_v21 = vunpack.i.h.bf16 %v1576_v17  ;;  %v1577_v37 = vunpack.i.l.bf16 %v1576_v17 }
  0xb6   : > { %1411 = vmatmul.mubr.msk.bf16.vlgmr.msra.gmra.mrb[0].mxu0 %vm980_vm11, %v952_v15  ;;  %v839_v25 = vsel %vm832_vm4, %v822_v11, %v1582_v23  ;;  %v840_v41 = vsel %vm832_vm4, %v823_v8, %v1583_v36 }
  0xb7   : > { %v1591_v5 = vpop.permute.xlu1 %1590  ;;  %v838_v42 = vsel %vm832_vm4, %v821_v35, %v1578_v21  ;;  %v837_v45 = vsel %vm832_vm4, %v820_v54, %v1577_v37 }
  0xb8   : > { %v1586_v19 = vpop.permute.xlu0 %1585  ;;  %v1593_v24 = vunpack.i.h.bf16 %v1591_v5  ;;  %v1592_v38 = vunpack.i.l.bf16 %v1591_v5 }
  0xb9   : > { %v1588_v39 = vunpack.i.h.bf16 %v1586_v19  ;;  %v1587_v16 = vunpack.i.l.bf16 %v1586_v19 }
  0xba   : > { %v856_v52 = vsel %vm849_vm5, %v839_v25, %v1592_v38  ;;  %v857_v46 = vsel %vm849_vm5, %v840_v41, %v1593_v24 }
  0xbb   : > { %v2294_v20 = vpop.permute.xlu1 %1600  ;;  %v854_v3 = vsel %vm849_vm5, %v837_v45, %v1587_v16  ;;  %v855_v56 = vsel %vm849_vm5, %v838_v42, %v1588_v39 }
  0xbc   : > { %v1596_v53 = vpop.permute.xlu0 %1595  ;;  %v1603_v57 = vunpack.i.h.bf16 %v2294_v20  ;;  %v1602_v59 = vunpack.i.l.bf16 %v2294_v20 }
  0xbd   : > { %v1598_v55 = vunpack.i.h.bf16 %v1596_v53  ;;  %v1597_v49 = vunpack.i.l.bf16 %v1596_v53 }
  0xbe   : > { %v873_v13 = vsel %vm866_vm6, %v856_v52, %v1602_v59  ;;  %v874_v29 = vsel %vm866_vm6, %v857_v46, %v1603_v57 }
  0xbf   : > { %v2296_v22 = vpop.permute.xlu1 %1610  ;;  %v871_v61 = vsel %vm866_vm6, %v854_v3, %v1597_v49  ;;  %v872_v62 = vsel %vm866_vm6, %v855_v56, %v1598_v55 }
  0xc0   : > { %v1606_v18 = vpop.permute.xlu0 %1605  ;;  %v1613_v10 = vunpack.i.h.bf16 %v2296_v22  ;;  %v1612_v63 = vunpack.i.l.bf16 %v2296_v22 }
  0xc1   : > { %v1608_v50 = vunpack.i.h.bf16 %v1606_v18  ;;  %v1607_v4 = vunpack.i.l.bf16 %v1606_v18 }
  0xc2   : > { %v890_v23 = vsel %vm883_vm7, %v873_v13, %v1612_v63  ;;  %v891_v21 = vsel %vm883_vm7, %v874_v29, %v1613_v10 }
  0xc3   : > { %v1621_v26 = vpop.permute.xlu1 %1620  ;;  %v888_v7 = vsel %vm883_vm7, %v871_v61, %v1607_v4  ;;  %v889_v0 = vsel %vm883_vm7, %v872_v62, %v1608_v50 }
  0xc4   : > { %v1616_v48 = vpop.permute.xlu0 %1615  ;;  %v1623_v1 = vunpack.i.h.bf16 %v1621_v26  ;;  %v1622_v2 = vunpack.i.l.bf16 %v1621_v26 }
  0xc5   : > { %v1618_v32 = vunpack.i.h.bf16 %v1616_v48  ;;  %v1617_v40 = vunpack.i.l.bf16 %v1616_v48 }
  0xc6   : > { %v907_v24 = vsel %vm900_vm8, %v890_v23, %v1622_v2  ;;  %v908_v38 = vsel %vm900_vm8, %v891_v21, %v1623_v1 }
  0xc7   : > { %v1631_v58 = vpop.permute.xlu1 %1630  ;;  %v905_v15 = vsel %vm900_vm8, %v888_v7, %v1617_v40  ;;  %v906_v17 = vsel %vm900_vm8, %v889_v0, %v1618_v32 }
  0xc8   : > { %v1626_v51 = vpop.permute.xlu0 %1625  ;;  %v1633_v20 = vunpack.i.h.bf16 %v1631_v58  ;;  %v1632_v53 = vunpack.i.l.bf16 %v1631_v58 }
  0xc9   : > { %v1628_v60 = vunpack.i.h.bf16 %v1626_v51  ;;  %v1627_v31 = vunpack.i.l.bf16 %v1626_v51 }
  0xca   : > { %v924_v11 = vsel %vm917_vm9, %v907_v24, %v1632_v53  ;;  %v925_v39 = vsel %vm917_vm9, %v908_v38, %v1633_v20 }
  0xcb   : > { %v1641_v9 = vpop.permute.xlu1 %1640  ;;  %v922_v18 = vsel %vm917_vm9, %v905_v15, %v1627_v31  ;;  %v923_v22 = vsel %vm917_vm9, %v906_v17, %v1628_v60 }
  0xcc   : > { %v1636_v6 = vpop.permute.xlu0 %1635  ;;  %v1643_v4 = vunpack.i.h.bf16 %v1641_v9  ;;  %v1642_v51 = vunpack.i.l.bf16 %v1641_v9 }
  0xcd   : > { %v1638_v5 = vunpack.i.h.bf16 %v1636_v6  ;;  %v1637_v19 = vunpack.i.l.bf16 %v1636_v6 }
  0xce   : > { %v825_v7 = vsel %vm815_vm3, %v2019_v14, %v1643_v4  ;;  %v824_v9 = vsel %vm815_vm3, %v2017_v12, %v1642_v51 }
  0xcf   : > { %v939_v30 = vsel %vm934_vm10, %v922_v18, %v1637_v19  ;;  %v940_v34 = vsel %vm934_vm10, %v923_v22, %v1638_v5  ;;  %v1651_v36 = vpop.permute.xlu1 %1650 }
  0xd0   : > { %v953_v37 = vpack.c.bf16 %v940_v34, %v939_v30  ;;  %v1646_v26 = vpop.permute.xlu0 %1645  ;;  %v1653_v46 = vunpack.i.h.bf16 %v1651_v36  ;;  %v1652_v50 = vunpack.i.l.bf16 %v1651_v36 }
  0xd1   : > { %v1648_v48 = vunpack.i.h.bf16 %v1646_v26  ;;  %v1647_v8 = vunpack.i.l.bf16 %v1646_v26 }
  0xd2   : > { %1414 = vmatprep.mubr.msk.bf16.mxu0 %vm980_vm11, %v953_v37  ;;  %v827_v61 = vsel %vm815_vm3, %v2066_v44, %v1653_v46  ;;  %v826_v62 = vsel %vm815_vm3, %v2055_v33, %v1652_v50 }
  0xd3   : > { %v942_v16 = vsel %vm934_vm10, %v925_v39, %v1648_v48  ;;  %v941_v35 = vsel %vm934_vm10, %v924_v11, %v1647_v8  ;;  %v1661_v54 = vpop.permute.xlu1 %1660 }
  0xd4   : > { %v954_v25 = vpack.c.bf16 %v942_v16, %v941_v35  ;;  %v1656_v41 = vpop.permute.xlu0 %1655  ;;  %v1663_v3 = vunpack.i.h.bf16 %v1661_v54  ;;  %v1662_v56 = vunpack.i.l.bf16 %v1661_v54 }
  0xd5   : > { %v1658_v32 = vunpack.i.h.bf16 %v1656_v41  ;;  %v1657_v40 = vunpack.i.l.bf16 %v1656_v41 }
  0xd6   : > { %1415 = vmatmul.mubr.msk.bf16.gmra.mrb[4].mxu0 %vm980_vm11, %v954_v25  ;;  %v843_v0 = vsel %vm832_vm4, %v826_v62, %v1662_v56  ;;  %v844_v1 = vsel %vm832_vm4, %v827_v61, %v1663_v3 }
  0xd7   : > { %v1671_v42 = vpop.permute.xlu1 %1670  ;;  %v842_v2 = vsel %vm832_vm4, %v825_v7, %v1658_v32  ;;  %v841_v6 = vsel %vm832_vm4, %v824_v9, %v1657_v40 }
  0xd8   : > { %v1666_v45 = vpop.permute.xlu0 %1665  ;;  %v1673_v59 = vunpack.i.h.bf16 %v1671_v42  ;;  %v1672_v60 = vunpack.i.l.bf16 %v1671_v42 }
  0xd9   : > { %v1668_v10 = vunpack.i.h.bf16 %v1666_v45  ;;  %v1667_v63 = vunpack.i.l.bf16 %v1666_v45 }
  0xda   : > { %v860_v33 = vsel %vm849_vm5, %v843_v0, %v1672_v60  ;;  %v861_v5 = vsel %vm849_vm5, %v844_v1, %v1673_v59 }
  0xdb   : > { %v2340_v55 = vpop.permute.xlu1 %1680  ;;  %v858_v12 = vsel %vm849_vm5, %v841_v6, %v1667_v63  ;;  %v859_v53 = vsel %vm849_vm5, %v842_v2, %v1668_v10 }
  0xdc   : > { %v1676_v49 = vpop.permute.xlu0 %1675  ;;  %v1683_v13 = vunpack.i.h.bf16 %v2340_v55  ;;  %v1682_v29 = vunpack.i.l.bf16 %v2340_v55 }
  0xdd   : > { %v1678_v44 = vunpack.i.h.bf16 %v1676_v49  ;;  %v1677_v15 = vunpack.i.l.bf16 %v1676_v49 }
  0xde   : > { %v877_v55 = vsel %vm866_vm6, %v860_v33, %v1682_v29  ;;  %v878_v49 = vsel %vm866_vm6, %v861_v5, %v1683_v13 }
  0xdf   : > { %v2342_v58 = vpop.permute.xlu1 %1690  ;;  %v875_v36 = vsel %vm866_vm6, %v858_v12, %v1677_v15  ;;  %v876_v23 = vsel %vm866_vm6, %v859_v53, %v1678_v44 }
  0xe0   : > { %v1686_v52 = vpop.permute.xlu0 %1685  ;;  %v1693_v21 = vunpack.i.h.bf16 %v2342_v58  ;;  %v1692_v37 = vunpack.i.l.bf16 %v2342_v58 }
  0xe1   : > { %v1688_v19 = vunpack.i.h.bf16 %v1686_v52  ;;  %v1687_v14 = vunpack.i.l.bf16 %v1686_v52 }
  0xe2   : > { %v894_v50 = vsel %vm883_vm7, %v877_v55, %v1692_v37  ;;  %v895_v4 = vsel %vm883_vm7, %v878_v49, %v1693_v21 }
  0xe3   : > { %v1701_v57 = vpop.permute.xlu1 %1700  ;;  %v892_v24 = vsel %vm883_vm7, %v875_v36, %v1687_v14  ;;  %v893_v38 = vsel %vm883_vm7, %v876_v23, %v1688_v19 }
  0xe4   : > { %v1696_v31 = vpop.permute.xlu0 %1695  ;;  %v1703_v48 = vunpack.i.h.bf16 %v1701_v57  ;;  %v1702_v8 = vunpack.i.l.bf16 %v1701_v57 }
  0xe5   : > { %v1698_v18 = vunpack.i.h.bf16 %v1696_v31  ;;  %v1697_v22 = vunpack.i.l.bf16 %v1696_v31 }
  0xe6   : > { %v911_v56 = vsel %vm900_vm8, %v894_v50, %v1702_v8  ;;  %v912_v32 = vsel %vm900_vm8, %v895_v4, %v1703_v48 }
  0xe7   : > { %v1711_v17 = vpop.permute.xlu1 %1710  ;;  %v909_v39 = vsel %vm900_vm8, %v892_v24, %v1697_v22  ;;  %v910_v16 = vsel %vm900_vm8, %v893_v38, %v1698_v18 }
  0xe8   : > { %v1706_v20 = vpop.permute.xlu0 %1705  ;;  %v1713_v25 = vunpack.i.h.bf16 %v1711_v17  ;;  %v1712_v41 = vunpack.i.l.bf16 %v1711_v17 }
  0xe9   : > { %v1708_v30 = vunpack.i.h.bf16 %v1706_v20  ;;  %v1707_v34 = vunpack.i.l.bf16 %v1706_v20 }
  0xea   : > { %v928_v59 = vsel %vm917_vm9, %v911_v56, %v1712_v41  ;;  %v929_v60 = vsel %vm917_vm9, %v912_v32, %v1713_v25 }
  0xeb   : > { %v1721_v26 = vpop.permute.xlu1 %1720  ;;  %v926_v42 = vsel %vm917_vm9, %v909_v39, %v1707_v34  ;;  %v927_v45 = vsel %vm917_vm9, %v910_v16, %v1708_v30 }
  0xec   : > { %v1716_v11 = vpop.permute.xlu0 %1715  ;;  %v1723_v44 = vunpack.i.h.bf16 %v1721_v26  ;;  %v1722_v15 = vunpack.i.l.bf16 %v1721_v26 }
  0xed   : > { %v1718_v35 = vunpack.i.h.bf16 %v1716_v11  ;;  %v1717_v54 = vunpack.i.l.bf16 %v1716_v11 }
  0xee   : > { %v829_v30 = vsel %vm815_vm3, %v2043_v28, %v1723_v44  ;;  %v828_v34 = vsel %vm815_vm3, %v2041_v27, %v1722_v15 }
  0xef   : > { %v1731_v58 = vpop.permute.xlu1 %1730  ;;  %v943_v52 = vsel %vm934_vm10, %v926_v42, %v1717_v54  ;;  %v944_v46 = vsel %vm934_vm10, %v927_v45, %v1718_v35 }
  0xf0   : > { %v1726_v51 = vpop.permute.xlu0 %1725  ;;  %v955_v3 = vpack.c.bf16 %v944_v46, %v943_v52  ;;  %v1733_v2 = vunpack.i.h.bf16 %v1731_v58  ;;  %v1732_v6 = vunpack.i.l.bf16 %v1731_v58 }
  0xf1   : > { %v1728_v40 = vunpack.i.h.bf16 %v1726_v51  ;;  %v1727_v57 = vunpack.i.l.bf16 %v1726_v51 }
  0xf2   : > { %1418 = vmatprep.mubr.msk.bf16.mxu1 %vm980_vm11, %v955_v3  ;;  %v831_v18 = vsel %vm815_vm3, %v2070_v47, %v1733_v2  ;;  %v830_v22 = vsel %vm815_vm3, %v2062_v43, %v1732_v6 }
  0xf3   : > { %v946_v31 = vsel %vm934_vm10, %v929_v60, %v1728_v40  ;;  %v945_v61 = vsel %vm934_vm10, %v928_v59, %v1727_v57  ;;  %v1741_v62 = vpop.permute.xlu1 %1740 }
  0xf4   : > { %v956_v10 = vpack.c.bf16 %v946_v31, %v945_v61  ;;  %v1736_v63 = vpop.permute.xlu0 %1735  ;;  %v1743_v17 = vunpack.i.h.bf16 %v1741_v62  ;;  %v1742_v33 = vunpack.i.l.bf16 %v1741_v62 }
  0xf5   : > { %v1738_v19 = vunpack.i.h.bf16 %v1736_v63  ;;  %v1737_v14 = vunpack.i.l.bf16 %v1736_v63 }
  0xf6   : > { %1419 = vmatmul.mubr.msk.bf16.vlgmr.msra.gmra.mrb[0].mxu1 %vm980_vm11, %v956_v10  ;;  %v847_v36 = vsel %vm832_vm4, %v830_v22, %v1742_v33  ;;  %v848_v23 = vsel %vm832_vm4, %v831_v18, %v1743_v17 }
  0xf7   : > { %v1751_v7 = vpop.permute.xlu1 %1750  ;;  %v846_v37 = vsel %vm832_vm4, %v829_v30, %v1738_v19  ;;  %v845_v47 = vsel %vm832_vm4, %v828_v34, %v1737_v14 }
  0xf8   : > { %v1746_v9 = vpop.permute.xlu0 %1745  ;;  %v1753_v12 = vunpack.i.h.bf16 %v1751_v7  ;;  %v1752_v53 = vunpack.i.l.bf16 %v1751_v7 }
  0xf9   : > { %v1748_v13 = vunpack.i.h.bf16 %v1746_v9  ;;  %v1747_v29 = vunpack.i.l.bf16 %v1746_v9 }
  0xfa   : > { %v864_v38 = vsel %vm849_vm5, %v847_v36, %v1752_v53  ;;  %v865_v48 = vsel %vm849_vm5, %v848_v23, %v1753_v12  ;;  %v2435_v12 = vld [vmem:[%s2552_s2] ss:$0 sm:$0xff] }
  0xfb   : > { %v1761_v0 = vpop.permute.xlu1 %1760  ;;  %v862_v27 = vsel %vm849_vm5, %v845_v47, %v1747_v29  ;;  %v863_v11 = vsel %vm849_vm5, %v846_v37, %v1748_v13 }
  0xfc   : > { %v1756_v1 = vpop.permute.xlu0 %1755  ;;  %v1763_v26 = vunpack.i.h.bf16 %v1761_v0  ;;  %v1762_v24 = vunpack.i.l.bf16 %v1761_v0 }
  0xfd   : > { %v1758_v28 = vunpack.i.h.bf16 %v1756_v1  ;;  %v1757_v8 = vunpack.i.l.bf16 %v1756_v1 }
  0xfe   : > { %v881_v45 = vsel %vm866_vm6, %v864_v38, %v1762_v24  ;;  %v882_v55 = vsel %vm866_vm6, %v865_v48, %v1763_v26 }
  0xff   : > { %v1771_v5 = vpop.permute.xlu1 %1770  ;;  %v879_v46 = vsel %vm866_vm6, %v862_v27, %v1757_v8  ;;  %v880_v50 = vsel %vm866_vm6, %v863_v11, %v1758_v28 }
 0x100   : > { %v1766_v20 = vpop.permute.xlu0 %1765  ;;  %v1773_v39 = vunpack.i.h.bf16 %v1771_v5  ;;  %v1772_v16 = vunpack.i.l.bf16 %v1771_v5 }
 0x101   : > { %v1768_v35 = vunpack.i.h.bf16 %v1766_v20  ;;  %v1767_v54 = vunpack.i.l.bf16 %v1766_v20 }
 0x102   : > { %v898_v3 = vsel %vm883_vm7, %v881_v45, %v1772_v16  ;;  %v899_v56 = vsel %vm883_vm7, %v882_v55, %v1773_v39 }
 0x103   : > { %v1781_v21 = vpop.permute.xlu1 %1780  ;;  %v896_v57 = vsel %vm883_vm7, %v879_v46, %v1767_v54  ;;  %v897_v59 = vsel %vm883_vm7, %v880_v50, %v1768_v35 }
 0x104   : > { %v1776_v43 = vpop.permute.xlu0 %1775  ;;  %v1783_v25 = vunpack.i.h.bf16 %v1781_v21  ;;  %v1782_v41 = vunpack.i.l.bf16 %v1781_v21 }
 0x105   : > { %v1778_v49 = vunpack.i.h.bf16 %v1776_v43  ;;  %v1777_v58 = vunpack.i.l.bf16 %v1776_v43 }
 0x106   : > { %v915_v60 = vsel %vm900_vm8, %v898_v3, %v1782_v41  ;;  %v916_v31 = vsel %vm900_vm8, %v899_v56, %v1783_v25 }
 0x107   : > { %v1791_v42 = vpop.permute.xlu1 %1790  ;;  %v913_v62 = vsel %vm900_vm8, %v896_v57, %v1777_v58  ;;  %v914_v10 = vsel %vm900_vm8, %v897_v59, %v1778_v49 }
 0x108   : > { %v1786_v52 = vpop.permute.xlu0 %1785  ;;  %v1793_v4 = vunpack.i.h.bf16 %v1791_v42  ;;  %v1792_v51 = vunpack.i.l.bf16 %v1791_v42 }
 0x109   : > { %v1788_v32 = vunpack.i.h.bf16 %v1786_v52  ;;  %v1787_v40 = vunpack.i.l.bf16 %v1786_v52 }
 0x10a   : > { %v932_v0 = vsel %vm917_vm9, %v915_v60, %v1792_v51  ;;  %v933_v1 = vsel %vm917_vm9, %v916_v31, %v1793_v4 }
 0x10b   : > { %v1801_v61 = vpop.permute.xlu1 %1800  ;;  %v930_v44 = vsel %vm917_vm9, %v913_v62, %v1787_v40  ;;  %v931_v15 = vsel %vm917_vm9, %v914_v10, %v1788_v32 }
 0x10c   : > { %v1803_v63 = vunpack.i.h.bf16 %v1801_v61  ;;  %v1802_v7 = vunpack.i.l.bf16 %v1801_v61  ;;  %v1796_v9 = vpop.permute.xlu0 %1795 }
 0x10d   : > { %v1798_v2 = vunpack.i.h.bf16 %v1796_v9  ;;  %v1797_v6 = vunpack.i.l.bf16 %v1796_v9 }
 0x10e   : > { %v949_v17 = vsel %vm934_vm10, %v932_v0, %v1802_v7  ;;  %v950_v33 = vsel %vm934_vm10, %v933_v1, %v1803_v63 }
 0x10f   : > { %v958_v5 = vpack.c.bf16 %v950_v33, %v949_v17  ;;  %v947_v19 = vsel %vm934_vm10, %v930_v44, %v1797_v6  ;;  %v948_v14 = vsel %vm934_vm10, %v931_v15, %v1798_v2 }
 0x110   : > { %v957_v20 = vpack.c.bf16 %v948_v14, %v947_v19 }
 0x112   : > { %1422 = vmatprep.mubr.msk.bf16.mxu1 %vm980_vm11, %v957_v20 }
 0x113   : > { %1423 = vmatmul.mubr.msk.bf16.gmra.mrb[4].mxu1 %vm980_vm11, %v958_v5 }
 0x189   : > { %v1412_v53 = vpop.f32.mrb[0].mxu0 }
 0x18a   : > { %v1052_v18 = vadd.f32 %v1412_v53, %v2435_v12  ;;  %v1043_v22 = vpop.f32.mrb[1].mxu0 }
 0x18b   : > { %v1044_v13 = vadd.f32 %v2435_v12, %v1043_v22  ;;  %v1413_v29 = vpop.f32.mrb[2].mxu0 }
 0x18c   : > { %v1108_v30 = vmax.f32 %v1052_v18, 0.0  ;;  %v1055_v34 = vadd.f32 %v1413_v29, %v2435_v12  ;;  %v1046_v36 = vpop.f32.mrb[3].mxu0 }
 0x18d   : > { %v1106_v23 = vmax.f32 %v1044_v13, 0.0  ;;  %v1047_v21 = vadd.f32 %v2435_v12, %v1046_v36 }
 0x18e   : > { %1124 = vst.msk [vmem:[%s2441_s15 + $0x10] sm:$0xff] %vm815_vm3, %v1108_v30  ;;  %v1109_v37 = vmax.f32 %v1055_v34, 0.0  ;;  %v1177_v24 = vmul.f32 %v1108_v30, %v1108_v30  ;;  %v1141_v8 = vsel %vm815_vm3, %v1108_v30, 0.0 }
 0x18f   : > { %1122 = vst.msk [vmem:[%s2441_s15] sm:$0xff] %vm815_vm3, %v1106_v23  ;;  %v1175_v47 = vmul.f32 %v1106_v23, %v1106_v23  ;;  %v1107_v26 = vmax.f32 %v1047_v21, 0.0  ;;  %v1138_v43 = vsel %vm815_vm3, %v1106_v23, 0.0 }
 0x190   : > { %1125 = vst.msk [vmem:[%s2441_s15 + $0x18] sm:$0xff] %vm815_vm3, %v1109_v37  ;;  %v1178_v11 = vmul.f32 %v1109_v37, %v1109_v37  ;;  %v1194_v54 = vsel %vm815_vm3, %v1177_v24, 0.0  ;;  %v1143_v25 = vsel %vm815_vm3, %v1109_v37, 0.0 }
 0x191   : > { %1123 = vst.msk [vmem:[%s2441_s15 + $0x8] sm:$0xff] %vm815_vm3, %v1107_v26  ;;  %v1139_v38 = vsel %vm815_vm3, %v1107_v26, 0.0  ;;  %v1176_v48 = vmul.f32 %v1107_v26, %v1107_v26  ;;  %v1191_v27 = vsel %vm815_vm3, %v1175_v47, 0.0 }
 0x192   : > { %v1140_v28 = vadd.f32 %v1139_v38, %v1138_v43  ;;  %v1196_v45 = vsel %vm815_vm3, %v1178_v11, 0.0 }
 0x193   : > { %v1192_v39 = vsel %vm815_vm3, %v1176_v48, 0.0 }
 0x194   : > { %v1142_v16 = vadd.f32 %v1141_v8, %v1140_v28  ;;  %v1193_v35 = vadd.f32 %v1192_v39, %v1191_v27 }
 0x196   : > { %v1195_v41 = vadd.f32 %v1194_v54, %v1193_v35  ;;  %v1144_v42 = vadd.f32 %v1143_v25, %v1142_v16 }
 0x198   : > { %v1197_v55 = vadd.f32 %v1196_v45, %v1195_v41 }
 0x1a9   : > { %v1416_v49 = vpop.f32.mrb[4].mxu0 }
 0x1aa   : > { %v1068_v58 = vadd.f32 %v1416_v49, %v2435_v12  ;;  %v1059_v52 = vpop.f32.mrb[5].mxu0 }
 0x1ab   : > { %v1060_v46 = vadd.f32 %v2435_v12, %v1059_v52  ;;  %v1417_v50 = vpop.f32.mrb[6].mxu0 }
 0x1ac   : > { %v1112_v4 = vmax.f32 %v1068_v58, 0.0  ;;  %v1071_v51 = vadd.f32 %v1417_v50, %v2435_v12  ;;  %v1062_v3 = vpop.f32.mrb[7].mxu0 }
 0x1ad   : > { %v1110_v56 = vmax.f32 %v1060_v46, 0.0  ;;  %v1063_v32 = vadd.f32 %v2435_v12, %v1062_v3 }
 0x1ae   : > { %1128 = vst.msk [vmem:[%s2441_s15 + $0x30] sm:$0xff] %vm815_vm3, %v1112_v4  ;;  %v1113_v40 = vmax.f32 %v1071_v51, 0.0  ;;  %v1181_v61 = vmul.f32 %v1112_v4, %v1112_v4  ;;  %v1149_v0 = vsel %vm815_vm3, %v1112_v4, 0.0 }
 0x1af   : > { %1126 = vst.msk [vmem:[%s2441_s15 + $0x20] sm:$0xff] %vm815_vm3, %v1110_v56  ;;  %v1145_v57 = vsel %vm815_vm3, %v1110_v56, 0.0  ;;  %v1179_v59 = vmul.f32 %v1110_v56, %v1110_v56  ;;  %v1111_v60 = vmax.f32 %v1063_v32, 0.0 }
 0x1b0   : > { %v1146_v31 = vadd.f32 %v1145_v57, %v1144_v42  ;;  %1129 = vst.msk [vmem:[%s2441_s15 + $0x38] sm:$0xff] %vm815_vm3, %v1113_v40  ;;  %v1182_v1 = vmul.f32 %v1113_v40, %v1113_v40  ;;  %v1202_v15 = vsel %vm815_vm3, %v1181_v61, 0.0  ;;  %v1151_v17 = vsel %vm815_vm3, %v1113_v40, 0.0 }
 0x1b1   : > { %v1198_v62 = vsel %vm815_vm3, %v1179_v59, 0.0  ;;  %1127 = vst.msk [vmem:[%s2441_s15 + $0x28] sm:$0xff] %vm815_vm3, %v1111_v60  ;;  %v1147_v10 = vsel %vm815_vm3, %v1111_v60, 0.0  ;;  %v1180_v63 = vmul.f32 %v1111_v60, %v1111_v60 }
 0x1b2   : > { %v1199_v7 = vadd.f32 %v1198_v62, %v1197_v55  ;;  %v1148_v9 = vadd.f32 %v1147_v10, %v1146_v31  ;;  %v1204_v19 = vsel %vm815_vm3, %v1182_v1, 0.0 }
 0x1b3   : > { %v1200_v2 = vsel %vm815_vm3, %v1180_v63, 0.0 }
 0x1b4   : > { %v1150_v6 = vadd.f32 %v1149_v0, %v1148_v9  ;;  %v1201_v44 = vadd.f32 %v1200_v2, %v1199_v7 }
 0x1b6   : > { %v1203_v33 = vadd.f32 %v1202_v15, %v1201_v44  ;;  %v1152_v5 = vadd.f32 %v1151_v17, %v1150_v6 }
 0x1b8   : > { %v1205_v14 = vadd.f32 %v1204_v19, %v1203_v33 }
 0x1c9   : > { %v1420_v20 = vpop.f32.mrb[0].mxu1 }
 0x1ca   : > { %v1084_v53 = vadd.f32 %v1420_v20, %v2435_v12  ;;  %v1075_v18 = vpop.f32.mrb[1].mxu1 }
 0x1cb   : > { %v1076_v22 = vadd.f32 %v2435_v12, %v1075_v18  ;;  %v1421_v13 = vpop.f32.mrb[2].mxu1 }
 0x1cc   : > { %v1116_v29 = vmax.f32 %v1084_v53, 0.0  ;;  %v1087_v30 = vadd.f32 %v1421_v13, %v2435_v12  ;;  %v1078_v34 = vpop.f32.mrb[3].mxu1 }
 0x1cd   : > { %v1114_v36 = vmax.f32 %v1076_v22, 0.0  ;;  %v1079_v23 = vadd.f32 %v2435_v12, %v1078_v34 }
 0x1ce   : > { %1132 = vst.msk [vmem:[%s2441_s15 + $0x50] sm:$0xff] %vm815_vm3, %v1116_v29  ;;  %v1117_v21 = vmax.f32 %v1087_v30, 0.0  ;;  %v1185_v43 = vmul.f32 %v1116_v29, %v1116_v29  ;;  %v1157_v11 = vsel %vm815_vm3, %v1116_v29, 0.0 }
 0x1cf   : > { %1130 = vst.msk [vmem:[%s2441_s15 + $0x40] sm:$0xff] %vm815_vm3, %v1114_v36  ;;  %v1153_v37 = vsel %vm815_vm3, %v1114_v36, 0.0  ;;  %v1183_v47 = vmul.f32 %v1114_v36, %v1114_v36  ;;  %v1115_v26 = vmax.f32 %v1079_v23, 0.0 }
 0x1d0   : > { %v1154_v24 = vadd.f32 %v1153_v37, %v1152_v5  ;;  %1133 = vst.msk [vmem:[%s2441_s15 + $0x58] sm:$0xff] %vm815_vm3, %v1117_v21  ;;  %v1186_v39 = vmul.f32 %v1117_v21, %v1117_v21  ;;  %v1210_v25 = vsel %vm815_vm3, %v1185_v43, 0.0  ;;  %v1159_v41 = vsel %vm815_vm3, %v1117_v21, 0.0 }
 0x1d1   : > { %v1206_v38 = vsel %vm815_vm3, %v1183_v47, 0.0  ;;  %1131 = vst.msk [vmem:[%s2441_s15 + $0x48] sm:$0xff] %vm815_vm3, %v1115_v26  ;;  %v1155_v48 = vsel %vm815_vm3, %v1115_v26, 0.0  ;;  %v1184_v28 = vmul.f32 %v1115_v26, %v1115_v26 }
 0x1d2   : > { %v1207_v8 = vadd.f32 %v1206_v38, %v1205_v14  ;;  %v1156_v27 = vadd.f32 %v1155_v48, %v1154_v24  ;;  %v1212_v55 = vsel %vm815_vm3, %v1186_v39, 0.0 }
 0x1d3   : > { %v1208_v16 = vsel %vm815_vm3, %v1184_v28, 0.0 }
 0x1d4   : > { %v1158_v35 = vadd.f32 %v1157_v11, %v1156_v27  ;;  %v1209_v54 = vadd.f32 %v1208_v16, %v1207_v8 }
 0x1d6   : > { %v1211_v42 = vadd.f32 %v1210_v25, %v1209_v54  ;;  %v1160_v45 = vadd.f32 %v1159_v41, %v1158_v35 }
 0x1d8   : > { %v1213_v49 = vadd.f32 %v1212_v55, %v1211_v42 }
 0x1e6   : > { %v1424_v58 = vpop.f32.mrb[4].mxu1 }
 0x1e7   : > { %v1100_v52 = vadd.f32 %v1424_v58, %v2435_v12  ;;  %v1091_v46 = vpop.f32.mrb[5].mxu1 }
 0x1e8   : > { %v1092_v50 = vadd.f32 %v2435_v12, %v1091_v46  ;;  %v1425_v4 = vpop.f32.mrb[6].mxu1 }
 0x1e9   : > { %v1120_v51 = vmax.f32 %v1100_v52, 0.0  ;;  %v1103_v3 = vadd.f32 %v1425_v4, %v2435_v12  ;;  %v1094_v56 = vpop.f32.mrb[7].mxu1 }
 0x1ea   : > { %v1118_v32 = vmax.f32 %v1092_v50, 0.0  ;;  %v1095_v40 = vadd.f32 %v2435_v12, %v1094_v56 }
 0x1eb   : > { %1136 = vst.msk [vmem:[%s2441_s15 + $0x70] sm:$0xff] %vm815_vm3, %v1120_v51  ;;  %v1121_v57 = vmax.f32 %v1103_v3, 0.0  ;;  %v1189_v62 = vmul.f32 %v1120_v51, %v1120_v51  ;;  %v1165_v0 = vsel %vm815_vm3, %v1120_v51, 0.0 }
 0x1ec   : > { %1134 = vst.msk [vmem:[%s2441_s15 + $0x60] sm:$0xff] %vm815_vm3, %v1118_v32  ;;  %v1161_v59 = vsel %vm815_vm3, %v1118_v32, 0.0  ;;  %v1187_v60 = vmul.f32 %v1118_v32, %v1118_v32  ;;  %v1119_v31 = vmax.f32 %v1095_v40, 0.0 }
 0x1ed   : > { %v1162_v61 = vadd.f32 %v1161_v59, %v1160_v45  ;;  %1137 = vst.msk [vmem:[%s2441_s15 + $0x78] sm:$0xff] %vm815_vm3, %v1121_v57  ;;  %v1190_v1 = vmul.f32 %v1121_v57, %v1121_v57  ;;  %v1218_v15 = vsel %vm815_vm3, %v1189_v62, 0.0  ;;  %v1167_v17 = vsel %vm815_vm3, %v1121_v57, 0.0 }
 0x1ee   : > { %v1214_v10 = vsel %vm815_vm3, %v1187_v60, 0.0  ;;  %1135 = vst.msk [vmem:[%s2441_s15 + $0x68] sm:$0xff] %vm815_vm3, %v1119_v31  ;;  %v1163_v63 = vsel %vm815_vm3, %v1119_v31, 0.0  ;;  %v1188_v12 = vmul.f32 %v1119_v31, %v1119_v31 }
 0x1ef   : > { %v1215_v7 = vadd.f32 %v1214_v10, %v1213_v49  ;;  %v1164_v9 = vadd.f32 %v1163_v63, %v1162_v61  ;;  %v1220_v19 = vsel %vm815_vm3, %v1190_v1, 0.0 }
 0x1f0   : > { %v1216_v2 = vsel %vm815_vm3, %v1188_v12, 0.0 }
 0x1f1   : > { %v1166_v6 = vadd.f32 %v1165_v0, %v1164_v9  ;;  %v1217_v44 = vadd.f32 %v1216_v2, %v1215_v7 }
 0x1f3   : > { %v1168_v33 = vadd.f32 %v1167_v17, %v1166_v6  ;;  %v1219_v5 = vadd.f32 %v1218_v15, %v1217_v44 }
 0x1f5   : > { %v1169_v14 = vrot.slane %v1168_v33, 4  ;;  %v1221_v20 = vadd.f32 %v1220_v19, %v1219_v5 }
 0x1f7   : > { %v1170_v53 = vadd.f32 %v1169_v14, %v1168_v33  ;;  %v1222_v18 = vrot.slane %v1221_v20, 4 }
 0x1f9   : > { %v1171_v22 = vrot.slane %v1170_v53, 2  ;;  %v1223_v13 = vadd.f32 %v1222_v18, %v1221_v20 }
 0x1fb   : > { %v1172_v29 = vadd.f32 %v1171_v22, %v1170_v53  ;;  %v1224_v30 = vrot.slane %v1223_v13, 2 }
 0x1fd   : > { %v1173_v34 = vrot.slane %v1172_v29, 1  ;;  %v1225_v36 = vadd.f32 %v1224_v30, %v1223_v13  ;;  %1235 = sbr.rel (%p2428_p9) target bundleno = 517 (0x205), region = 36 }
 0x1ff   : > { %v1226_v23 = vrot.slane %v1225_v36, 1  ;;  %v1174_v21 = vadd.f32 %v1173_v34, %v1172_v29 }
 0x201   : > { %v1227_v37 = vadd.f32 %v1226_v23, %v1225_v36 }
 0x203   : > { %v1229_v47 = vsel %vm1228_vm12, %v1174_v21, %v1227_v37 }
 0x204   : > { %1237 = vst.msk [vmem:[%s2554_s4] sm:$0x3] %vm1236_vm13, %v1229_v47 }
 0x205 PF: > { %1240 = sbr.rel (!%p2428_p9) target bundleno = 527 (0x20f), region = 40  ;;  %vm1243_vm14 = vcmask (%p2428_p9), 25600  }
 0x20b   : > { %v1241_v26 = vld [vmem:[%s2554_s4] sm:$0x3] (%p2428_p9) }
 0x20c   : > { %v1242_v24 = vadd.f32 %v1241_v26, %v1229_v47 }
 0x20e   : > { %1244 = vst.msk [vmem:[%s2554_s4] sm:$0x3] %vm1243_vm14, %v1242_v24 }
 0x20f PF: > { %s15_s19 = sadd.s32 1, %s1845_s19   ;;  %s2556_s15 = smov %s1837_s17 }
 0x210   : > { %p12_p10 = scmp.ge.s32.totalorder %s15_s19, 6   ;;  %s2557_s16 = smov %s1841_s18 }
 0x211   : > { %s2558_s17 = smov %s2561_s20  ;;  %s2559_s18 = smov %s2565_s21 }
 0x212   :  { %14 = sbr.rel (!%p12_p10) target bundleno = 3 (0x3), region = 78 }

</bundles_post_ra>
